<compile_context>
chip_gen: v7x
topology: tpu7x:2x2x1
jax: 0.10.0
libtpu: 0.0.40
codegen_flags: <defaults>
</compile_context>

<pallas_src>
import jax
import jax.numpy as jnp
import numpy as np
from jax import lax
from jax.experimental import pallas as pl
from jax.experimental.pallas import tpu as pltpu

EPS = 1e-5
VMEM_LIMIT = 48 * 1024 * 1024    # safe across v5e/v6e (128 MiB) and v7x (64 MiB/TC)
VMEM_BUDGET = 32 * 1024 * 1024   # target for per-step scratch + double-buffered I/O


# ---------------------------------------------------------------------------
# In-kernel helpers
# ---------------------------------------------------------------------------
def _conv3x3_im2col(interior_bf16, pad_ref, cols_ref, w_ref):
    """3x3 'SAME' conv of a (B, H, W, C) block as one fused MXU matmul (K = 9*C).

    interior_bf16 : (B, H, W, C) bf16 value (activation already applied).
    pad_ref       : (B, H+2, W+2, C) bf16 VMEM scratch (zero halo + interior).
    cols_ref      : (B*H*W, 9*C)     bf16 VMEM scratch (im2col slab).
    w_ref         : (9*C, C) bf16 weights, rows ordered (dy, dx, cin) == HWIO.reshape.
    Returns (B*H*W, C) f32.
    """
    B, H, W, C = interior_bf16.shape
    Hp, Wp = H + 2, W + 2
    M = B * H * W

    # Zero only the 1-pixel halo; the interior is always overwritten below.
    # TODO(synk): halo could be zeroed once per core (needs a safe per-core init
    # flag under megacore splitting); re-zeroing per step is a minor cost.
    zero_row = jnp.zeros((B, 1, Wp, C), jnp.bfloat16)
    zero_col = jnp.zeros((B, H, 1, C), jnp.bfloat16)
    pad_ref[:, 0:1, :, :] = zero_row
    pad_ref[:, Hp - 1:Hp, :, :] = zero_row
    pad_ref[:, 1:H + 1, 0:1, :] = zero_col
    pad_ref[:, 1:H + 1, Wp - 1:Wp, :] = zero_col
    pad_ref[:, 1:H + 1, 1:W + 1, :] = interior_bf16

    # im2col: 9 shifted taps, each read straight from the Ref (no full-slab load).
    tap = 0
    for dy in range(3):
        for dx in range(3):
            cols_ref[:, tap * C:(tap + 1) * C] = (
                pad_ref[:, dy:dy + H, dx:dx + W, :].reshape(M, C))
            tap += 1

    # Single K = 9*C contraction on the MXU: bf16 operands, f32 accumulation.
    return jnp.dot(cols_ref[...], w_ref[...], preferred_element_type=jnp.float32)


def _write_stats(stat_ref, y, C):
    """Pack per-block BN sum / sumsq (f32) into one lane-dense (1, 1, 2*C) block."""
    stat_ref[:, :, 0:C] = jnp.sum(y, axis=0, keepdims=True).reshape(1, 1, C)
    stat_ref[:, :, C:2 * C] = jnp.sum(y * y, axis=0, keepdims=True).reshape(1, 1, C)


# ---------------------------------------------------------------------------
# Kernels
# ---------------------------------------------------------------------------
def conv_stats_kernel(x_ref, w_ref, y_ref, stat_ref, pad_ref, cols_ref):
    """Pass 1: conv1 (no bias) + per-block BN1 partial statistics."""
    B, H, W, C = x_ref.shape
    y = _conv3x3_im2col(x_ref[...].astype(jnp.bfloat16), pad_ref, cols_ref, w_ref)
    _write_stats(stat_ref, y, C)                     # stats in f32, before the cast
    y_ref[...] = y.reshape(B, H, W, C).astype(jnp.bfloat16)


def affine_relu_conv_stats_kernel(y1_ref, sc_ref, sh_ref, w_ref,
                                  y2_ref, stat_ref, pad_ref, cols_ref):
    """Pass 2: BN1 affine + ReLU + conv2 (no bias) + per-block BN2 partials."""
    B, H, W, C = y1_ref.shape
    sc = sc_ref[...].reshape(1, 1, 1, C)
    sh = sh_ref[...].reshape(1, 1, 1, C)
    a = jnp.maximum(y1_ref[...].astype(jnp.float32) * sc + sh, 0.0)   # f32 math
    y = _conv3x3_im2col(a.astype(jnp.bfloat16), pad_ref, cols_ref, w_ref)
    _write_stats(stat_ref, y, C)
    y2_ref[...] = y.reshape(B, H, W, C).astype(jnp.bfloat16)


def residual_bn_relu_kernel(y2_ref, x_ref, sc_ref, sh_ref, o_ref):
    """Pass 3: BN2 affine + residual add + ReLU on a lane-dense (rows, W*C) slab."""
    o_ref[...] = jnp.maximum(
        y2_ref[...].astype(jnp.float32) * sc_ref[...] + sh_ref[...] + x_ref[...],
        0.0)


# ---------------------------------------------------------------------------
# Wrapper
# ---------------------------------------------------------------------------
def _bn_affine(psum, psumsq, count, gamma, beta):
    """Fold global training-mode BN stats into a per-channel scale/shift pair."""
    mean = psum / count
    var = jnp.maximum(psumsq / count - mean * mean, 0.0)   # biased variance
    inv = lax.rsqrt(var + EPS)
    scale = gamma * inv
    shift = beta - mean * scale
    return scale, shift


def _pick_step_batch(N, H, W, C):
    """Largest per-step batch B (dividing N) whose scratch + I/O fits the budget."""
    per_img = (
        (H + 2) * (W + 2) * C * 2        # bf16 pad scratch
        + H * W * 9 * C * 2              # bf16 im2col scratch
        + 2 * H * W * C * 4              # double-buffered f32 input block
        + 2 * H * W * C * 2              # double-buffered bf16 output block
    )
    b = int(max(1, min(N, VMEM_BUDGET // per_img)))
    while N % b:
        b -= 1
    return b


def _pick_rows(total, cap=1024):
    """Largest multiple-of-8 divisor of `total` that is <= cap (or total itself)."""
    if total <= cap:
        return total
    r = cap - (cap % 8)
    while r >= 8:
        if total % r == 0:
            return r
        r -= 8
    return total


def basic_block(x_nchw, params):
    """x_nchw: [N, C, H, W] float32. Returns [N, C, H, W] float32."""
    w1, b1, g1, be1, w2, b2, g2, be2 = params
    # Conv bias followed by training-mode BN is exactly cancelled -> drop it.
    del b1, b2

    N, C, H, W = x_nchw.shape
    # TODO(synk): NCHW<->NHWC transposes could be dropped if the surrounding
    # network stays NHWC; kept here to preserve the module's NCHW interface.
    x = jnp.transpose(x_nchw, (0, 2, 3, 1)).astype(jnp.float32)    # NHWC, no pad
    w1f = w1.reshape(9 * C, C).astype(jnp.bfloat16)                # rows = (dy,dx,cin)
    w2f = w2.reshape(9 * C, C).astype(jnp.bfloat16)
    count = float(N * H * W)

    B = _pick_step_batch(N, H, W, C)
    NB = N // B
    cparams = pltpu.CompilerParams(dimension_semantics=("parallel",),
                                   vmem_limit_bytes=VMEM_LIMIT)

    img_spec = pl.BlockSpec((B, H, W, C), lambda n: (n, 0, 0, 0))
    w_spec = pl.BlockSpec((9 * C, C), lambda n: (0, 0))
    vec_spec = pl.BlockSpec((1, C), lambda n: (0, 0))
    stat_spec = pl.BlockSpec((1, 1, 2 * C), lambda n: (n, 0, 0))
    conv_scratch = [pltpu.VMEM((B, H + 2, W + 2, C), jnp.bfloat16),
                    pltpu.VMEM((B * H * W, 9 * C), jnp.bfloat16)]
    conv_out_shape = (jax.ShapeDtypeStruct((N, H, W, C), jnp.bfloat16),
                      jax.ShapeDtypeStruct((NB, 1, 2 * C), jnp.float32))
    conv_out_specs = (img_spec, stat_spec)

    # ---- Pass 1: conv1 + BN1 partial statistics --------------------------
    y1, st1 = pl.pallas_call(
        conv_stats_kernel,
        grid=(NB,),
        in_specs=[img_spec, w_spec],
        out_specs=conv_out_specs,
        out_shape=conv_out_shape,
        scratch_shapes=conv_scratch,
        compiler_params=cparams,
    )(x, w1f)
    tot1 = jnp.sum(st1, axis=(0, 1))
    scale1, shift1 = _bn_affine(tot1[:C], tot1[C:], count, g1, be1)

    # ---- Pass 2: BN1 affine + ReLU + conv2 + BN2 partial statistics ------
    y2, st2 = pl.pallas_call(
        affine_relu_conv_stats_kernel,
        grid=(NB,),
        in_specs=[img_spec, vec_spec, vec_spec, w_spec],
        out_specs=conv_out_specs,
        out_shape=conv_out_shape,
        scratch_shapes=conv_scratch,
        compiler_params=cparams,
    )(y1, scale1.reshape(1, C), shift1.reshape(1, C), w2f)
    tot2 = jnp.sum(st2, axis=(0, 1))
    scale2, shift2 = _bn_affine(tot2[:C], tot2[C:], count, g2, be2)

    # ---- Pass 3: BN2 affine + residual + ReLU (large lane-dense tiles) ---
    NR = N * H
    R = _pick_rows(NR)
    y2_2d = y2.reshape(NR, W * C)      # free row-major reshapes in the wrapper
    x_2d = x.reshape(NR, W * C)
    sc2 = jnp.tile(scale2.reshape(1, C), (1, W))      # (1, W*C) per-channel pattern
    sh2 = jnp.tile(shift2.reshape(1, C), (1, W))
    slab_spec = pl.BlockSpec((R, W * C), lambda n: (n, 0))
    row_spec = pl.BlockSpec((1, W * C), lambda n: (0, 0))

    out2d = pl.pallas_call(
        residual_bn_relu_kernel,
        grid=(NR // R,),
        in_specs=[slab_spec, slab_spec, row_spec, row_spec],
        out_specs=slab_spec,
        out_shape=jax.ShapeDtypeStruct((NR, W * C), jnp.float32),
        compiler_params=cparams,
    )(y2_2d, x_2d, sc2, sh2)

    out = out2d.reshape(N, H, W, C)
    return jnp.transpose(out, (0, 3, 1, 2))                        # back to NCHW


# ---------------------------------------------------------------------------
# Pure-JAX reference (no Pallas) for correctness checking
# ---------------------------------------------------------------------------
def basic_block_ref(x_nchw, params):
    w1, b1, g1, be1, w2, b2, g2, be2 = params
    x = jnp.transpose(x_nchw, (0, 2, 3, 1))
    dn = lax.conv_dimension_numbers(x.shape, w1.shape, ('NHWC', 'HWIO', 'NHWC'))

    def conv(y, w, b):
        return lax.conv_general_dilated(y, w, (1, 1), 'SAME',
                                        dimension_numbers=dn) + b

    def bn(y, g, be):
        m = jnp.mean(y, axis=(0, 1, 2), keepdims=True)
        v = jnp.mean((y - m) ** 2, axis=(0, 1, 2), keepdims=True)
        return (y - m) * lax.rsqrt(v + EPS) * g + be

    out = jax.nn.relu(bn(conv(x, w1, b1), g1, be1))
    out = bn(conv(out, w2, b2), g2, be2)
    out = jax.nn.relu(out + x)
    return jnp.transpose(out, (0, 3, 1, 2))


if __name__ == "__main__":
    num_filters = 64      # module default
    N, H, W = 2, 8, 8     # small synthetic shapes

    key = jax.random.PRNGKey(0)
    k_x, k_w1, k_w2, k_b1, k_b2 = jax.random.split(key, 5)

    x = jax.random.normal(k_x, (N, num_filters, H, W), jnp.float32)

    fan_in = num_filters * 3 * 3
    scale = 1.0 / np.sqrt(fan_in)
    w1 = jax.random.normal(k_w1, (3, 3, num_filters, num_filters), jnp.float32) * scale
    w2 = jax.random.normal(k_w2, (3, 3, num_filters, num_filters), jnp.float32) * scale
    b1 = jax.random.normal(k_b1, (num_filters,), jnp.float32) * 0.01
    b2 = jax.random.normal(k_b2, (num_filters,), jnp.float32) * 0.01
    g1 = jnp.ones((num_filters,), jnp.float32)    # BN weight init (PyTorch default)
    be1 = jnp.zeros((num_filters,), jnp.float32)
    g2 = jnp.ones((num_filters,), jnp.float32)
    be2 = jnp.zeros((num_filters,), jnp.float32)

    params = (w1, b1, g1, be1, w2, b2, g2, be2)

    out = jax.block_until_ready(basic_block(x, params))
    ref = jax.block_until_ready(basic_block_ref(x, params))
    np.testing.assert_allclose(np.asarray(out), np.asarray(ref), rtol=2e-2, atol=2e-2)

    print("KERNEL_OK")
</pallas_src>

<mosaic_0001>
module attributes {stable_mosaic.version = 11 : i64} {
  func.func @conv_stats_kernel(%arg0: i32, %arg1: memref<2x8x8x64xf32, #tpu.memory_space<vmem>>, %arg2: memref<576x64xbf16, #tpu.memory_space<vmem>>, %arg3: memref<2x8x8x64xbf16, #tpu.memory_space<vmem>>, %arg4: memref<1x1x128xf32, #tpu.memory_space<vmem>>, %arg5: memref<2x10x10x64xbf16, #tpu.memory_space<vmem>>, %arg6: memref<128x576xbf16, #tpu.memory_space<vmem>>) attributes {dimension_semantics = [#tpu.dimension_semantics<parallel>], iteration_bounds = array<i64: 1>, scalar_prefetch = 0 : i64, scratch_operands = 2 : i64, tpu.core_type = #tpu.core_type<tc>, window_params = [{transform_indices = @transform_0, window_bounds = array<i64: 2, 8, 8, 64>}, {pipeline_mode = #tpu.pipeline_mode<synchronous>, transform_indices = @transform_1, window_bounds = array<i64: 576, 64>}, {transform_indices = @transform_2, window_bounds = array<i64: 2, 8, 8, 64>}, {transform_indices = @transform_3, window_bounds = array<i64: 1, 1, 128>}]} {
    %c0 = arith.constant 0 : index
    %c0_0 = arith.constant 0 : index
    %c0_1 = arith.constant 0 : index
    %c0_2 = arith.constant 0 : index
    %0 = vector.load %arg1[%c0, %c0_0, %c0_1, %c0_2] : memref<2x8x8x64xf32, #tpu.memory_space<vmem>>, vector<2x8x8x64xf32>
    %1 = arith.truncf %0 : vector<2x8x8x64xf32> to vector<2x8x8x64xbf16>
    %cst = arith.constant 0.000000e+00 : bf16
    %2 = vector.broadcast %cst : bf16 to vector<2x1x10x64xbf16>
    %cst_3 = arith.constant 0.000000e+00 : bf16
    %3 = vector.broadcast %cst_3 : bf16 to vector<2x8x1x64xbf16>
    %c0_4 = arith.constant 0 : index
    %c0_5 = arith.constant 0 : index
    %c0_6 = arith.constant 0 : index
    %c0_7 = arith.constant 0 : index
    %4 = vector.load %arg5[%c0_4, %c0_5, %c0_6, %c0_7] : memref<2x10x10x64xbf16, #tpu.memory_space<vmem>>, vector<2x1x10x64xbf16>
    tpu.vector_store %arg5[%c0_4, %c0_5, %c0_6, %c0_7], %2 {strides = array<i32>} : memref<2x10x10x64xbf16, #tpu.memory_space<vmem>>, vector<2x1x10x64xbf16>,
    %c0_8 = arith.constant 0 : index
    %c9 = arith.constant 9 : index
    %c0_9 = arith.constant 0 : index
    %c0_10 = arith.constant 0 : index
    %5 = vector.load %arg5[%c0_8, %c9, %c0_9, %c0_10] : memref<2x10x10x64xbf16, #tpu.memory_space<vmem>>, vector<2x1x10x64xbf16>
    tpu.vector_store %arg5[%c0_8, %c9, %c0_9, %c0_10], %2 {strides = array<i32>} : memref<2x10x10x64xbf16, #tpu.memory_space<vmem>>, vector<2x1x10x64xbf16>,
    %c0_11 = arith.constant 0 : index
    %c1 = arith.constant 1 : index
    %c0_12 = arith.constant 0 : index
    %c0_13 = arith.constant 0 : index
    %6 = vector.load %arg5[%c0_11, %c1, %c0_12, %c0_13] : memref<2x10x10x64xbf16, #tpu.memory_space<vmem>>, vector<2x8x1x64xbf16>
    tpu.vector_store %arg5[%c0_11, %c1, %c0_12, %c0_13], %3 {strides = array<i32>} : memref<2x10x10x64xbf16, #tpu.memory_space<vmem>>, vector<2x8x1x64xbf16>,
    %c0_14 = arith.constant 0 : index
    %c1_15 = arith.constant 1 : index
    %c9_16 = arith.constant 9 : index
    %c0_17 = arith.constant 0 : index
    %7 = vector.load %arg5[%c0_14, %c1_15, %c9_16, %c0_17] : memref<2x10x10x64xbf16, #tpu.memory_space<vmem>>, vector<2x8x1x64xbf16>
    tpu.vector_store %arg5[%c0_14, %c1_15, %c9_16, %c0_17], %3 {strides = array<i32>} : memref<2x10x10x64xbf16, #tpu.memory_space<vmem>>, vector<2x8x1x64xbf16>,
    %c0_18 = arith.constant 0 : index
    %c1_19 = arith.constant 1 : index
    %c1_20 = arith.constant 1 : index
    %c0_21 = arith.constant 0 : index
    %8 = vector.load %arg5[%c0_18, %c1_19, %c1_20, %c0_21] : memref<2x10x10x64xbf16, #tpu.memory_space<vmem>>, vector<2x8x8x64xbf16>
    tpu.vector_store %arg5[%c0_18, %c1_19, %c1_20, %c0_21], %1 {strides = array<i32>} : memref<2x10x10x64xbf16, #tpu.memory_space<vmem>>, vector<2x8x8x64xbf16>,
    %c0_22 = arith.constant 0 : index
    %c0_23 = arith.constant 0 : index
    %c0_24 = arith.constant 0 : index
    %c0_25 = arith.constant 0 : index
    %9 = vector.load %arg5[%c0_22, %c0_23, %c0_24, %c0_25] : memref<2x10x10x64xbf16, #tpu.memory_space<vmem>>, vector<2x8x8x64xbf16>
    %10 = vector.shape_cast %9 : vector<2x8x8x64xbf16> to vector<128x64xbf16>
    %c0_26 = arith.constant 0 : index
    %c0_27 = arith.constant 0 : index
    %11 = vector.load %arg6[%c0_26, %c0_27] : memref<128x576xbf16, #tpu.memory_space<vmem>>, vector<128x64xbf16>
    tpu.vector_store %arg6[%c0_26, %c0_27], %10 {strides = array<i32>} : memref<128x576xbf16, #tpu.memory_space<vmem>>, vector<128x64xbf16>,
    %c0_28 = arith.constant 0 : index
    %c0_29 = arith.constant 0 : index
    %c1_30 = arith.constant 1 : index
    %c0_31 = arith.constant 0 : index
    %12 = vector.load %arg5[%c0_28, %c0_29, %c1_30, %c0_31] : memref<2x10x10x64xbf16, #tpu.memory_space<vmem>>, vector<2x8x8x64xbf16>
    %13 = vector.shape_cast %12 : vector<2x8x8x64xbf16> to vector<128x64xbf16>
    %c0_32 = arith.constant 0 : index
    %c64 = arith.constant 64 : index
    %14 = vector.load %arg6[%c0_32, %c64] : memref<128x576xbf16, #tpu.memory_space<vmem>>, vector<128x64xbf16>
    tpu.vector_store %arg6[%c0_32, %c64], %13 {strides = array<i32>} : memref<128x576xbf16, #tpu.memory_space<vmem>>, vector<128x64xbf16>,
    %c0_33 = arith.constant 0 : index
    %c0_34 = arith.constant 0 : index
    %c2 = arith.constant 2 : index
    %c0_35 = arith.constant 0 : index
    %15 = vector.load %arg5[%c0_33, %c0_34, %c2, %c0_35] : memref<2x10x10x64xbf16, #tpu.memory_space<vmem>>, vector<2x8x8x64xbf16>
    %16 = vector.shape_cast %15 : vector<2x8x8x64xbf16> to vector<128x64xbf16>
    %c0_36 = arith.constant 0 : index
    %c128 = arith.constant 128 : index
    %17 = vector.load %arg6[%c0_36, %c128] : memref<128x576xbf16, #tpu.memory_space<vmem>>, vector<128x64xbf16>
    tpu.vector_store %arg6[%c0_36, %c128], %16 {strides = array<i32>} : memref<128x576xbf16, #tpu.memory_space<vmem>>, vector<128x64xbf16>,
    %c0_37 = arith.constant 0 : index
    %c1_38 = arith.constant 1 : index
    %c0_39 = arith.constant 0 : index
    %c0_40 = arith.constant 0 : index
    %18 = vector.load %arg5[%c0_37, %c1_38, %c0_39, %c0_40] : memref<2x10x10x64xbf16, #tpu.memory_space<vmem>>, vector<2x8x8x64xbf16>
    %19 = vector.shape_cast %18 : vector<2x8x8x64xbf16> to vector<128x64xbf16>
    %c0_41 = arith.constant 0 : index
    %c192 = arith.constant 192 : index
    %20 = vector.load %arg6[%c0_41, %c192] : memref<128x576xbf16, #tpu.memory_space<vmem>>, vector<128x64xbf16>
    tpu.vector_store %arg6[%c0_41, %c192], %19 {strides = array<i32>} : memref<128x576xbf16, #tpu.memory_space<vmem>>, vector<128x64xbf16>,
    %c0_42 = arith.constant 0 : index
    %c1_43 = arith.constant 1 : index
    %c1_44 = arith.constant 1 : index
    %c0_45 = arith.constant 0 : index
    %21 = vector.load %arg5[%c0_42, %c1_43, %c1_44, %c0_45] : memref<2x10x10x64xbf16, #tpu.memory_space<vmem>>, vector<2x8x8x64xbf16>
    %22 = vector.shape_cast %21 : vector<2x8x8x64xbf16> to vector<128x64xbf16>
    %c0_46 = arith.constant 0 : index
    %c256 = arith.constant 256 : index
    %23 = vector.load %arg6[%c0_46, %c256] : memref<128x576xbf16, #tpu.memory_space<vmem>>, vector<128x64xbf16>
    tpu.vector_store %arg6[%c0_46, %c256], %22 {strides = array<i32>} : memref<128x576xbf16, #tpu.memory_space<vmem>>, vector<128x64xbf16>,
    %c0_47 = arith.constant 0 : index
    %c1_48 = arith.constant 1 : index
    %c2_49 = arith.constant 2 : index
    %c0_50 = arith.constant 0 : index
    %24 = vector.load %arg5[%c0_47, %c1_48, %c2_49, %c0_50] : memref<2x10x10x64xbf16, #tpu.memory_space<vmem>>, vector<2x8x8x64xbf16>
    %25 = vector.shape_cast %24 : vector<2x8x8x64xbf16> to vector<128x64xbf16>
    %c0_51 = arith.constant 0 : index
    %c320 = arith.constant 320 : index
    %26 = vector.load %arg6[%c0_51, %c320] : memref<128x576xbf16, #tpu.memory_space<vmem>>, vector<128x64xbf16>
    tpu.vector_store %arg6[%c0_51, %c320], %25 {strides = array<i32>} : memref<128x576xbf16, #tpu.memory_space<vmem>>, vector<128x64xbf16>,
    %c0_52 = arith.constant 0 : index
    %c2_53 = arith.constant 2 : index
    %c0_54 = arith.constant 0 : index
    %c0_55 = arith.constant 0 : index
    %27 = vector.load %arg5[%c0_52, %c2_53, %c0_54, %c0_55] : memref<2x10x10x64xbf16, #tpu.memory_space<vmem>>, vector<2x8x8x64xbf16>
    %28 = vector.shape_cast %27 : vector<2x8x8x64xbf16> to vector<128x64xbf16>
    %c0_56 = arith.constant 0 : index
    %c384 = arith.constant 384 : index
    %29 = vector.load %arg6[%c0_56, %c384] : memref<128x576xbf16, #tpu.memory_space<vmem>>, vector<128x64xbf16>
    tpu.vector_store %arg6[%c0_56, %c384], %28 {strides = array<i32>} : memref<128x576xbf16, #tpu.memory_space<vmem>>, vector<128x64xbf16>,
    %c0_57 = arith.constant 0 : index
    %c2_58 = arith.constant 2 : index
    %c1_59 = arith.constant 1 : index
    %c0_60 = arith.constant 0 : index
    %30 = vector.load %arg5[%c0_57, %c2_58, %c1_59, %c0_60] : memref<2x10x10x64xbf16, #tpu.memory_space<vmem>>, vector<2x8x8x64xbf16>
    %31 = vector.shape_cast %30 : vector<2x8x8x64xbf16> to vector<128x64xbf16>
    %c0_61 = arith.constant 0 : index
    %c448 = arith.constant 448 : index
    %32 = vector.load %arg6[%c0_61, %c448] : memref<128x576xbf16, #tpu.memory_space<vmem>>, vector<128x64xbf16>
    tpu.vector_store %arg6[%c0_61, %c448], %31 {strides = array<i32>} : memref<128x576xbf16, #tpu.memory_space<vmem>>, vector<128x64xbf16>,
    %c0_62 = arith.constant 0 : index
    %c2_63 = arith.constant 2 : index
    %c2_64 = arith.constant 2 : index
    %c0_65 = arith.constant 0 : index
    %33 = vector.load %arg5[%c0_62, %c2_63, %c2_64, %c0_65] : memref<2x10x10x64xbf16, #tpu.memory_space<vmem>>, vector<2x8x8x64xbf16>
    %34 = vector.shape_cast %33 : vector<2x8x8x64xbf16> to vector<128x64xbf16>
    %c0_66 = arith.constant 0 : index
    %c512 = arith.constant 512 : index
    %35 = vector.load %arg6[%c0_66, %c512] : memref<128x576xbf16, #tpu.memory_space<vmem>>, vector<128x64xbf16>
    tpu.vector_store %arg6[%c0_66, %c512], %34 {strides = array<i32>} : memref<128x576xbf16, #tpu.memory_space<vmem>>, vector<128x64xbf16>,
    %c0_67 = arith.constant 0 : index
    %c0_68 = arith.constant 0 : index
    %36 = vector.load %arg6[%c0_67, %c0_68] : memref<128x576xbf16, #tpu.memory_space<vmem>>, vector<128x576xbf16>
    %c0_69 = arith.constant 0 : index
    %c0_70 = arith.constant 0 : index
    %37 = vector.load %arg2[%c0_69, %c0_70] : memref<576x64xbf16, #tpu.memory_space<vmem>>, vector<576x64xbf16>
    %cst_71 = arith.constant dense<0.000000e+00> : vector<128x64xf32>
    %38 = tpu.matmul %36, %37, %cst_71 {dimension_numbers = #tpu.dot_dimension_numbers<[1], [0], [0], [1], [0, 0, 1, 1], [], []>} : vector<128x576xbf16>, vector<576x64xbf16>, vector<128x64xf32> -> vector<128x64xf32>
    %cst_72 = arith.constant dense<0.000000e+00> : vector<64xf32>
    %39 = vector.multi_reduction <add>, %38, %cst_72 [0] : vector<128x64xf32> to vector<64xf32>
    %40 = vector.shape_cast %39 : vector<64xf32> to vector<1x64xf32>
    %41 = vector.shape_cast %40 : vector<1x64xf32> to vector<1x1x64xf32>
    %c0_73 = arith.constant 0 : index
    %c0_74 = arith.constant 0 : index
    %c0_75 = arith.constant 0 : index
    %42 = vector.load %arg4[%c0_73, %c0_74, %c0_75] : memref<1x1x128xf32, #tpu.memory_space<vmem>>, vector<1x1x64xf32>
    tpu.vector_store %arg4[%c0_73, %c0_74, %c0_75], %41 {strides = array<i32>} : memref<1x1x128xf32, #tpu.memory_space<vmem>>, vector<1x1x64xf32>,
    %43 = arith.mulf %38, %38 : vector<128x64xf32>
    %cst_76 = arith.constant dense<0.000000e+00> : vector<64xf32>
    %44 = vector.multi_reduction <add>, %43, %cst_76 [0] : vector<128x64xf32> to vector<64xf32>
    %45 = vector.shape_cast %44 : vector<64xf32> to vector<1x64xf32>
    %46 = vector.shape_cast %45 : vector<1x64xf32> to vector<1x1x64xf32>
    %c0_77 = arith.constant 0 : index
    %c0_78 = arith.constant 0 : index
    %c64_79 = arith.constant 64 : index
    %47 = vector.load %arg4[%c0_77, %c0_78, %c64_79] : memref<1x1x128xf32, #tpu.memory_space<vmem>>, vector<1x1x64xf32>
    tpu.vector_store %arg4[%c0_77, %c0_78, %c64_79], %46 {strides = array<i32>} : memref<1x1x128xf32, #tpu.memory_space<vmem>>, vector<1x1x64xf32>,
    %48 = vector.shape_cast %38 : vector<128x64xf32> to vector<2x8x8x64xf32>
    %49 = arith.truncf %48 : vector<2x8x8x64xf32> to vector<2x8x8x64xbf16>
    %c0_80 = arith.constant 0 : index
    %c0_81 = arith.constant 0 : index
    %c0_82 = arith.constant 0 : index
    %c0_83 = arith.constant 0 : index
    %50 = vector.load %arg3[%c0_80, %c0_81, %c0_82, %c0_83] : memref<2x8x8x64xbf16, #tpu.memory_space<vmem>>, vector<2x8x8x64xbf16>
    tpu.vector_store %arg3[%c0_80, %c0_81, %c0_82, %c0_83], %49 {strides = array<i32>} : memref<2x8x8x64xbf16, #tpu.memory_space<vmem>>, vector<2x8x8x64xbf16>,
    return
  }
  func.func @transform_0(%arg0: i32) -> (i32, i32, i32, i32) {
    %c0_i32 = arith.constant 0 : i32
    %c0_i32_0 = arith.constant 0 : i32
    %c0_i32_1 = arith.constant 0 : i32
    %c0_i32_2 = arith.constant 0 : i32
    return %arg0, %c0_i32, %c0_i32_0, %c0_i32_1 : i32, i32, i32, i32
  }
  func.func @transform_1(%arg0: i32) -> (i32, i32) {
    %c0_i32 = arith.constant 0 : i32
    %c0_i32_0 = arith.constant 0 : i32
    %c0_i32_1 = arith.constant 0 : i32
    return %c0_i32, %c0_i32_0 : i32, i32
  }
  func.func @transform_2(%arg0: i32) -> (i32, i32, i32, i32) {
    %c0_i32 = arith.constant 0 : i32
    %c0_i32_0 = arith.constant 0 : i32
    %c0_i32_1 = arith.constant 0 : i32
    %c0_i32_2 = arith.constant 0 : i32
    return %arg0, %c0_i32, %c0_i32_0, %c0_i32_1 : i32, i32, i32, i32
  }
  func.func @transform_3(%arg0: i32) -> (i32, i32, i32) {
    %c0_i32 = arith.constant 0 : i32
    %c0_i32_0 = arith.constant 0 : i32
    %c0_i32_1 = arith.constant 0 : i32
    return %arg0, %c0_i32, %c0_i32_0 : i32, i32, i32
  }
}

</mosaic_0001>

<bundles_post_ra>
// kernel: tpu_custom_call.1
= control target key start
LH: loop header
LB: loop body
LE: loop exit
PB: predicated region body
PF: predicated region fallthrough
CT: control target
= control target key end

     0   :  { %9 = vsyncpa [#allocation5], 0  ;;  %vm50_vm0 = vcmask 516096   ;;  %vm61_vm1 = vsmask.f32 256  ;;  %vm48_vm4 = vcmask 519168   ;;  %s4426_s0 = inlined_call_operand.vmem [shape: f32[2,8,8,64], index: 0, kind: input, shape index: {}]   ;;  %s4427_s1 = inlined_call_operand.vmem [shape: bf16[576,64], index: 1, kind: input, shape index: {}]   ;;  %s4428_s2 = inlined_call_operand.hbm [shape: bf16[2,8,8,64], index: 2, kind: output, shape index: {0}]   ;;  %s4429_s3 = inlined_call_operand.hbm [shape: f32[1,1,128], index: 3, kind: output, shape index: {1}]  }
   0x1   :  { %v18_v0 = vld [vmem:[%s4426_s0 + $0x10] sm:$0xff]  ;;  %v19_v1 = vld [vmem:[%s4426_s0 + $0x18] sm:$0xff]  ;;  %vm3463_vm2 = vmand %vm50_vm0, %vm61_vm1  ;;  %vm111_vm3 = vsmask.f32 7938  ;;  %v3431_v17 = vmov 0   ;;  %s3432_s24 = smov 64  }
   0x2   :  { %v69_v3 = vld [vmem:[#allocation2 + $0x18] sm:$0x1]  ;;  %v72_v4 = vld [vmem:[#allocation2 + $0x20] sm:$0x1]  ;;  %v3132_v5 = vpack.c.bf16 %v18_v0, %v18_v0  ;;  %v3133_v6 = vpack.c.bf16 %v19_v1, %v19_v1  ;;  %vm3473_vm5 = vmand %vm50_vm0, %vm111_vm3  ;;  %49 = vst.msk [vmem:[#allocation2] sm:$0xf] %vm48_vm4, %v3431_v17 }
   0x3   :  { %v70_v7 = vsel %vm3463_vm2, 0, %v69_v3  ;;  %v73_v8 = vsel %vm3463_vm2, 0, %v72_v4  ;;  %v16_v10 = vld [vmem:[%s4426_s0] sm:$0xff]  ;;  %v17_v11 = vld [vmem:[%s4426_s0 + $0x8] sm:$0xff]  ;;  %51 = vst.msk [vmem:[#allocation2 + $0x4] sm:$0x1] %vm50_vm0, %v3431_v17  ;;  %vm3508_vm6 = vmand %vm48_vm4, %vm111_vm3 }
   0x4   :  { %71 = vst [vmem:[#allocation2 + $0x18] sm:$0x1] %v70_v7  ;;  %74 = vst [vmem:[#allocation2 + $0x20] sm:$0x1] %v73_v8  ;;  %v226_v12 = vshrl.u32 %v3132_v5, 16  ;;  %v229_v13 = vshll.u32 %v3132_v5, 16  ;;  %v3130_v20 = vpack.c.bf16 %v16_v10, %v16_v10  ;;  %v3131_v21 = vpack.c.bf16 %v17_v11, %v17_v11 }
   0x5   :  { %v234_v14 = vshrl.u32 %v3133_v6, 16  ;;  %v237_v15 = vshll.u32 %v3133_v6, 16  ;;  %v63_v16 = vld [vmem:[#allocation2 + $0x8] sm:$0x1]  ;;  %52 = vst.msk [vmem:[#allocation2 + $0x50] sm:$0xf] %vm48_vm4, %v3431_v17 }
   0x6   :  { %53 = vst.msk [vmem:[#allocation2 + $0x54] sm:$0x1] %vm50_vm0, %v3431_v17  ;;  %56 = vst.msk [vmem:[#allocation2 + $0x4c] sm:$0x1] %vm50_vm0, %v3431_v17  ;;  %v64_v18 = vsel %vm3463_vm2, 0, %v63_v16  ;;  %v20_v23 = vld [vmem:[%s4426_s0 + $0x20] sm:$0xff] }
   0x7   :  { %55 = vst.msk [vmem:[#allocation2 + $0x48] sm:$0xf] %vm48_vm4, %v3431_v17  ;;  %57 = vst.msk [vmem:[#allocation2 + $0x98] sm:$0xf] %vm48_vm4, %v3431_v17  ;;  %v66_v19 = vld [vmem:[#allocation2 + $0x10] sm:$0x1]  ;;  %v3134_v46 = vpack.c.bf16 %v20_v23, %v20_v23 }
   0x8   :  { %58 = vst.msk [vmem:[#allocation2 + $0x9c] sm:$0x1] %vm50_vm0, %v3431_v17  ;;  %v116_v22 = vld [vmem:[#allocation2 + $0x14] sm:$0x1]  ;;  %v3496_v24 = vrot.slane %v226_v12, 7  ;;  %v3498_v25 = vrot.slane %v234_v14, 7 }
   0x9   :  { %65 = vst [vmem:[#allocation2 + $0x8] sm:$0x1] %v64_v18  ;;  %v67_v26 = vsel %vm3463_vm2, 0, %v66_v19  ;;  %v117_v27 = vsel %vm3473_vm5, 0, %v116_v22  ;;  %v119_v28 = vld [vmem:[#allocation2 + $0x1c] sm:$0x1] }
   0xa   :  { %68 = vst [vmem:[#allocation2 + $0x10] sm:$0x1] %v67_v26  ;;  %v210_v29 = vshrl.u32 %v3130_v20, 16  ;;  %v213_v30 = vshll.u32 %v3130_v20, 16  ;;  %v218_v31 = vshrl.u32 %v3131_v21, 16  ;;  %v221_v32 = vshll.u32 %v3131_v21, 16 }
   0xb   :  { %118 = vst [vmem:[#allocation2 + $0x14] sm:$0x1] %v117_v27  ;;  %v113_v33 = vld [vmem:[#allocation2 + $0xc] sm:$0x1]  ;;  %v231_v34 = vor.u32 %v229_v13, %v3496_v24  ;;  %v239_v35 = vor.u32 %v237_v15, %v3498_v25  ;;  %v75_v36 = vld [vmem:[#allocation2 + $0x28] sm:$0x1] }
   0xc   :  { %v3512_v38 = vrot.slane %v210_v29, 7  ;;  %v220_v39 = vrot.slane %v218_v31, 7  ;;  %v120_v40 = vsel %vm3473_vm5, 0, %v119_v28  ;;  %v21_v41 = vld [vmem:[%s4426_s0 + $0x28] sm:$0xff]  ;;  %v232_v42 = vrot.slane %v3496_v24, 4 }
   0xd   :  { %121 = vst [vmem:[#allocation2 + $0x1c] sm:$0x1] %v120_v40  ;;  %v114_v43 = vsel %vm3473_vm5, 0, %v113_v33  ;;  %v76_v44 = vsel %vm3463_vm2, 0, %v75_v36  ;;  %v78_v45 = vld [vmem:[#allocation2 + $0x30] sm:$0x1]  ;;  %v3135_v58 = vpack.c.bf16 %v21_v41, %v21_v41 }
   0xe   :  { %v383_v47 = vld [vmem:[#allocation2 + $0x18] sm:$0xf]  ;;  %v389_v48 = vld [vmem:[#allocation2 + $0x20] sm:$0xf]  ;;  %v215_v49 = vor.u32 %v213_v30, %v3512_v38  ;;  %v216_v50 = vrot.slane %v3512_v38, 4  ;;  %v223_v51 = vor.u32 %v221_v32, %v220_v39  ;;  %v224_v52 = vrot.slane %v220_v39, 4 }
   0xf   :  { %vm572_vm7 = vsmask.f32 3328  ;;  %115 = vst [vmem:[#allocation2 + $0xc] sm:$0x1] %v114_v43  ;;  %77 = vst [vmem:[#allocation2 + $0x28] sm:$0x1] %v76_v44  ;;  %v384_v53 = vsel %vm3508_vm6, %v231_v34, %v383_v47  ;;  %v390_v54 = vsel %vm3508_vm6, %v239_v35, %v389_v48 }
  0x10   :  { %v540_v55 = vld [vmem:[#allocation2] sm:$0xf]  ;;  %v541_v56 = vld [vmem:[#allocation2 + $0x4] sm:$0x1]  ;;  %v79_v57 = vsel %vm3463_vm2, 0, %v78_v45  ;;  %v242_v63 = vshrl.u32 %v3134_v46, 16 }
  0x11   :  { %385 = vst [vmem:[#allocation2 + $0x18] sm:$0xf] %v384_v53  ;;  %391 = vst [vmem:[#allocation2 + $0x20] sm:$0xf] %v390_v54  ;;  %v371_v59 = vld [vmem:[#allocation2 + $0x8] sm:$0xf] }
  0x12   :  { %v576_v60 = vshrl.u32 %v540_v55, 16  ;;  %v579_v61 = vshll.u32 %v540_v55, 16  ;;  %v585_v62 = vshll.u32 %v541_v56, 16  ;;  %80 = vst [vmem:[#allocation2 + $0x30] sm:$0x1] %v79_v57  ;;  %v372_v0 = vsel %vm3508_vm6, %v215_v49, %v371_v59 }
  0x13   :  { %v377_v1 = vld [vmem:[#allocation2 + $0x10] sm:$0xf]  ;;  %v380_v3 = vld [vmem:[#allocation2 + $0x14] sm:$0x1]  ;;  %v245_v4 = vshll.u32 %v3134_v46, 16  ;;  %v250_v5 = vshrl.u32 %v3135_v58, 16 }
  0x14   :  { %373 = vst [vmem:[#allocation2 + $0x8] sm:$0xf] %v372_v0  ;;  %v378_v6 = vsel %vm3508_vm6, %v223_v51, %v377_v1  ;;  %v381_v7 = vsel %vm3463_vm2, %v224_v52, %v380_v3  ;;  %v578_v8 = vrot.slane %v576_v60, 4  ;;  %v581_v10 = vrot.slane %v579_v61, 5  ;;  %v122_v11 = vld [vmem:[#allocation2 + $0x24] sm:$0x1] }
  0x15   :  { %379 = vst [vmem:[#allocation2 + $0x10] sm:$0xf] %v378_v6  ;;  %382 = vst [vmem:[#allocation2 + $0x14] sm:$0x1] %v381_v7  ;;  %v3538_v12 = vrot.slane %v242_v63, 7  ;;  %v3540_v13 = vrot.slane %v250_v5, 7 }
  0x16   :  { %v253_v14 = vshll.u32 %v3135_v58, 16  ;;  %v125_v15 = vld [vmem:[#allocation2 + $0x2c] sm:$0x1]  ;;  %v240_v16 = vrot.slane %v3498_v25, 4  ;;  %v386_v17 = vld [vmem:[#allocation2 + $0x1c] sm:$0x1]  ;;  %v582_v18 = vor.u32 %v581_v10, %v578_v8 }
  0x17   :  { %vm573_vm8 = vsmask.f32 7440  ;;  %v123_v19 = vsel %vm3473_vm5, 0, %v122_v11  ;;  %v387_v20 = vsel %vm3463_vm2, %v232_v42, %v386_v17  ;;  %v374_v21 = vld [vmem:[#allocation2 + $0xc] sm:$0x1]  ;;  %v3547_v22 = vrot.slane %v585_v62, 5 }
  0x18   :  { %v247_v23 = vor.u32 %v245_v4, %v3538_v12  ;;  %v255_v24 = vor.u32 %v253_v14, %v3540_v13  ;;  %v395_v26 = vld [vmem:[#allocation2 + $0x28] sm:$0xf]  ;;  %124 = vst [vmem:[#allocation2 + $0x24] sm:$0x1] %v123_v19  ;;  %388 = vst [vmem:[#allocation2 + $0x1c] sm:$0x1] %v387_v20  ;;  %v375_v27 = vsel %vm3463_vm2, %v216_v50, %v374_v21 }
  0x19   :  { %v3553_v28 = vrot.slane %v582_v18, 4  ;;  %v248_v29 = vrot.slane %v3538_v12, 4  ;;  %v126_v30 = vsel %vm3473_vm5, 0, %v125_v15  ;;  %v3323_v31 = vld [vmem:[#allocation2 + $0x18] ss:$8 sps:$4 sm:$0xff]   ;;  %vm3565_vm9 = vmor %vm572_vm7, %vm573_vm8  ;;  %vm920_vm10 = vcmask 1042432  }
  0x1a   :  { %376 = vst [vmem:[#allocation2 + $0xc] sm:$0x1] %v375_v27  ;;  %v396_v32 = vsel %vm3508_vm6, %v247_v23, %v395_v26  ;;  %127 = vst [vmem:[#allocation2 + $0x2c] sm:$0x1] %v126_v30  ;;  %v546_v33 = vld [vmem:[#allocation2 + $0x18] sm:$0xf]  ;;  %1085 = vrot.lane.b32.xlu1 %v3323_v31, %s3432_s24 }
  0x1b   :  { %v3560_v34 = vld [vmem:[#allocation2 + $0x18] sm:$0xf]  ;;  %397 = vst [vmem:[#allocation2 + $0x28] sm:$0xf] %v396_v32  ;;  %v401_v35 = vld [vmem:[#allocation2 + $0x30] sm:$0xf]  ;;  %v588_v58 = vsel %vm3565_vm9, %v3553_v28, %v3547_v22 }
  0x1c   :  { %v618_v38 = vshrl.u32 %v546_v33, 16  ;;  %v621_v39 = vshll.u32 %v546_v33, 16  ;;  %v542_v40 = vld [vmem:[#allocation2 + $0x8] sm:$0xf]  ;;  %v402_v41 = vsel %vm3508_vm6, %v255_v24, %v401_v35  ;;  %v544_v43 = vld [vmem:[#allocation2 + $0x10] sm:$0xf] }
  0x1d   :  { %v3324_v42 = vld [vmem:[#allocation2 + $0x8] ss:$8 sps:$4 sm:$0xff]   ;;  %403 = vst [vmem:[#allocation2 + $0x30] sm:$0xf] %v402_v41  ;;  %vm921_vm11 = vcmask 1046532   ;;  %v604_v45 = vshrl.u32 %v544_v43, 16 }
  0x1e   :  { %v545_v44 = vld [vmem:[#allocation2 + $0x14] sm:$0x1]  ;;  %v607_v46 = vshll.u32 %v544_v43, 16  ;;  %v620_v47 = vrot.slane %v618_v38, 4  ;;  %v623_v48 = vrot.slane %v621_v39, 5  ;;  %1083 = vrot.lane.b32.xlu0 %v3324_v42, %s3432_s24  ;;  %v590_v50 = vshrl.u32 %v542_v40, 16  ;;  %vm3594_vm12 = vmor %vm920_vm10, %vm921_vm11 }
  0x1f   :  { %v613_v49 = vshll.u32 %v545_v44, 16  ;;  %v593_v51 = vshll.u32 %v542_v40, 16  ;;  %v1668_v52 = vld [vmem:[#allocation2 + $0x10] sm:$0xf]  ;;  %v1715_v53 = vshrl.u32 %v3560_v34, 16  ;;  %v606_v55 = vrot.slane %v604_v45, 4 }
  0x20   :  { %v547_v54 = vld [vmem:[#allocation2 + $0x1c] sm:$0x1]  ;;  %v609_v56 = vrot.slane %v607_v46, 5  ;;  %v624_v57 = vor.u32 %v623_v48, %v620_v47  ;;  %v1669_v59 = vld [vmem:[#allocation2 + $0x14] sm:$0x1]  ;;  %v592_v63 = vrot.slane %v590_v50, 4 }
  0x21   :  { %v615_v60 = vrot.slane %v613_v49, 5  ;;  %v627_v61 = vshll.u32 %v547_v54, 16  ;;  %v543_v62 = vld [vmem:[#allocation2 + $0xc] sm:$0x1]  ;;  %v595_v0 = vrot.slane %v593_v51, 5  ;;  %v1701_v6 = vshrl.u32 %v1668_v52, 16 }
  0x22   :  { %v610_v1 = vor.u32 %v609_v56, %v606_v55  ;;  %v625_v3 = vrot.slane %v624_v57, 4  ;;  %v599_v4 = vshll.u32 %v543_v62, 16  ;;  %v1671_v5 = vld [vmem:[#allocation2 + $0x1c] sm:$0x1]  ;;  %v1704_v10 = vshll.u32 %v1668_v52, 16  ;;  %v22_v23 = vld [vmem:[%s4426_s0 + $0x30] sm:$0xff] }
  0x23   :  { %v629_v7 = vrot.slane %v627_v61, 5  ;;  %v596_v8 = vor.u32 %v595_v0, %v592_v63  ;;  %v1710_v11 = vshll.u32 %v1669_v59, 16  ;;  %v1703_v17 = vrot.slane %v1701_v6, 4  ;;  %v1411_v28 = vld [vmem:[#allocation2 + $0x8] sm:$0xe]  ;;  %v23_v40 = vld [vmem:[%s4426_s0 + $0x38] sm:$0xff] }
  0x24   :  { %v611_v14 = vrot.slane %v610_v1, 4  ;;  %v601_v15 = vrot.slane %v599_v4, 5  ;;  %v1717_v18 = vrot.slane %v1715_v53, 4  ;;  %v1706_v21 = vrot.slane %v1704_v10, 5  ;;  %v1412_v30 = vld [vmem:[#allocation2 + $0xc] sm:$0x1] }
  0x25   :  { %v630_v19 = vsel %vm3565_vm9, %v625_v3, %v629_v7  ;;  %v597_v20 = vrot.slane %v596_v8, 4  ;;  %v3579_v22 = vrot.slane %v1710_v11, 5  ;;  %v1718_v26 = vshll.u32 %v3560_v34, 16  ;;  %v1413_v35 = vld [vmem:[#allocation2 + $0x10] sm:$0xe]  ;;  %v3331_v52 = vld [vmem:[%s4427_s1 + $0x40] sm:$0xff]  }
  0x26   :  { %v616_v24 = vsel %vm3565_vm9, %v611_v14, %v615_v60  ;;  %v1724_v27 = vshll.u32 %v1671_v5, 16  ;;  %v1707_v33 = vor.u32 %v1706_v21, %v1703_v17  ;;  %v1414_v38 = vld [vmem:[#allocation2 + $0x14] sm:$0x1]  ;;  %v3022_v39 = vrot.slane %v1411_v28, 9  ;;  %v3325_v44 = vld [vmem:[#allocation2 + $0x28] ss:$8 sps:$4 sm:$0xff]   ;;  %3146 = vmatprep.subr.bf16.mxu0 %v3331_v52 }
  0x27   :  { %v2975_v31 = vcombine.low %v616_v24, %v630_v19  ;;  %v602_v32 = vsel %vm3565_vm9, %v597_v20, %v601_v15  ;;  %v1720_v42 = vrot.slane %v1718_v26, 5  ;;  %v1477_v45 = vrot.slane %v1412_v30, 5  ;;  %v392_v46 = vld [vmem:[#allocation2 + $0x24] sm:$0x1]  ;;  %v398_v51 = vld [vmem:[#allocation2 + $0x2c] sm:$0x1] }
  0x28   :  { %v2974_v41 = vcombine.low %v588_v58, %v602_v32  ;;  %v1726_v43 = vrot.slane %v1724_v27, 5  ;;  %v1708_v47 = vrot.slane %v1707_v33, 4  ;;  %v3023_v48 = vrot.slane %v1413_v35, 9  ;;  %v548_v55 = vld [vmem:[#allocation2 + $0x20] sm:$0xf]  ;;  %v3333_v17 = vld [vmem:[%s4427_s1 + $0x48] sm:$0xff]  }
  0x29   :  { %825 = vrot.lane.b32.xlu1 %v2975_v31, %s3432_s24  ;;  %v1481_v49 = vrot.slane %v1414_v38, 5  ;;  %v393_v50 = vsel %vm3463_vm2, %v240_v16, %v392_v46  ;;  %v1721_v53 = vor.u32 %v1720_v42, %v1717_v18  ;;  %v399_v54 = vsel %vm3463_vm2, %v248_v29, %v398_v51  ;;  %v550_v56 = vld [vmem:[#allocation2 + $0x28] sm:$0xf]  ;;  %v1672_v25 = vld [vmem:[#allocation2 + $0x20] sm:$0xf] }
  0x2a   :  { %823 = vrot.lane.b32.xlu0 %v2974_v41, %s3432_s24  ;;  %394 = vst [vmem:[#allocation2 + $0x24] sm:$0x1] %v393_v50  ;;  %v3611_v57 = vpack.c.bf16 %v22_v23, %v22_v23  ;;  %v3613_v16 = vpack.c.bf16 %v23_v40, %v23_v40  ;;  %v1713_v58 = vsel %vm3565_vm9, %v1708_v47, %v3579_v22  ;;  %400 = vst [vmem:[#allocation2 + $0x2c] sm:$0x1] %v399_v54  ;;  %v1674_v61 = vld [vmem:[#allocation2 + $0x28] sm:$0xf] }
  0x2b   :  { %v1478_v59 = vsel %vm3594_vm12, %v3022_v39, %v1477_v45  ;;  %v632_v60 = vshrl.u32 %v548_v55, 16  ;;  %v635_v12 = vshll.u32 %v548_v55, 16  ;;  %v1722_v29 = vrot.slane %v1721_v53, 4  ;;  %v3332_v1 = vld [vmem:[%s4427_s1] sm:$0xff]   ;;  %v81_v7 = vld [vmem:[#allocation2 + $0x38] sm:$0x1] }
  0x2c   :  { %v1482_v62 = vsel %vm3594_vm12, %v3023_v48, %v1481_v49  ;;  %v646_v63 = vshrl.u32 %v550_v56, 16  ;;  %v649_v0 = vshll.u32 %v550_v56, 16  ;;  %v1729_v5 = vshrl.u32 %v1672_v25, 16  ;;  %v84_v15 = vld [vmem:[#allocation2 + $0x40] sm:$0x1]  ;;  %3147 = vmatpush3.bf16.msra.mxu0 %v3332_v1  ;;  %v3334_v27 = vld [vmem:[%s4427_s1 + $0x8] sm:$0xff]  }
  0x2d   :  { %v634_v3 = vrot.slane %v632_v60, 4  ;;  %v637_v4 = vrot.slane %v635_v12, 5  ;;  %v1732_v6 = vshll.u32 %v1672_v25, 16  ;;  %v1727_v8 = vsel %vm3565_vm9, %v1722_v29, %v1726_v43  ;;  %3148 = vmatprep.subr.bf16.mxu0 %v3333_v17  ;;  %v1415_v46 = vld [vmem:[#allocation2 + $0x18] sm:$0xe]  ;;  %v24_v47 = vld [vmem:[%s4426_s0 + $0x40] sm:$0xff] }
  0x2e   :  { %1087 = vrot.lane.b32.xlu0 %v3325_v44, %s3432_s24  ;;  %v648_v10 = vrot.slane %v646_v63, 4  ;;  %v651_v11 = vrot.slane %v649_v0, 5  ;;  %v1743_v14 = vshrl.u32 %v1674_v61, 16  ;;  %v3054_v18 = vcombine.low %v1713_v58, %v1727_v8  ;;  %v1416_v52 = vld [vmem:[#allocation2 + $0x1c] sm:$0x1]  ;;  %v25_v53 = vld [vmem:[%s4426_s0 + $0x48] sm:$0xff] }
  0x2f   :  { %v638_v19 = vor.u32 %v637_v4, %v634_v3  ;;  %v1731_v20 = vrot.slane %v1729_v5, 4  ;;  %v1734_v21 = vrot.slane %v1732_v6, 5  ;;  %v1746_v24 = vshll.u32 %v1674_v61, 16  ;;  %v1417_v58 = vld [vmem:[#allocation2 + $0x20] sm:$0xe] }
  0x30   :  { %v652_v22 = vor.u32 %v651_v11, %v648_v10  ;;  %v1745_v23 = vrot.slane %v1743_v14, 4  ;;  %v82_v26 = vsel %vm3463_vm2, 0, %v81_v7  ;;  %1948 = vrot.lane.b32.xlu1 %v3054_v18, %s3432_s24  ;;  %v3038_v28 = vcombine.low %v1478_v59, %v1482_v62  ;;  %3149 = vmatpush3.bf16.msra.mxu0 %v3334_v27  ;;  %v3335_v59 = vld [vmem:[%s4427_s1 + $0x50] sm:$0xff]   ;;  %v131_v5 = vld [vmem:[#allocation2 + $0x3c] sm:$0x1] }
  0x31   :  { %v549_v30 = vld [vmem:[#allocation2 + $0x24] sm:$0x1]  ;;  %v639_v31 = vrot.slane %v638_v19, 4  ;;  %v1735_v33 = vor.u32 %v1734_v21, %v1731_v20  ;;  %83 = vst [vmem:[#allocation2 + $0x38] sm:$0x1] %v82_v26  ;;  %v85_v35 = vsel %vm3463_vm2, 0, %v84_v15  ;;  %3150 = vmatprep.subr.bf16.mxu0 %v3335_v59  ;;  %v3667_v11 = vpack.c.bf16 %v24_v47, %v24_v47 }
  0x32   :  { %v1673_v32 = vld [vmem:[#allocation2 + $0x24] sm:$0x1]  ;;  %v551_v38 = vld [vmem:[#allocation2 + $0x2c] sm:$0x1]  ;;  %v641_v39 = vshll.u32 %v549_v30, 16  ;;  %v653_v40 = vrot.slane %v652_v22, 4  ;;  %v3672_v20 = vpack.c.bf16 %v25_v53, %v25_v53 }
  0x33   :  { %v1675_v41 = vld [vmem:[#allocation2 + $0x2c] sm:$0x1]  ;;  %86 = vst [vmem:[#allocation2 + $0x40] sm:$0x1] %v85_v35  ;;  %v655_v42 = vshll.u32 %v551_v38, 16  ;;  %v1736_v43 = vrot.slane %v1735_v33, 4 }
  0x34   :  { %v1738_v44 = vshll.u32 %v1673_v32, 16  ;;  %v1748_v45 = vrot.slane %v1746_v24, 5  ;;  %v643_v48 = vrot.slane %v641_v39, 5  ;;  %v1752_v49 = vshll.u32 %v1675_v41, 16  ;;  %1563 = vrot.lane.b32.xlu1 %v3038_v28, %s3432_s24  ;;  %v128_v29 = vld [vmem:[#allocation2 + $0x34] sm:$0x1] }
  0x35   :  { %v258_v50 = vshrl.u32 %v3611_v57, 16  ;;  %v261_v51 = vshll.u32 %v3611_v57, 16  ;;  %v657_v54 = vrot.slane %v655_v42, 5  ;;  %v266_v25 = vshrl.u32 %v3613_v16, 16  ;;  %v3336_v62 = vld [vmem:[%s4427_s1 + $0x10] sm:$0xff]   ;;  %v3337_v41 = vld [vmem:[%s4427_s1 + $0xc0] sm:$0xff]  }
  0x36   :  { %v1740_v55 = vrot.slane %v1738_v44, 5  ;;  %v1749_v56 = vor.u32 %v1748_v45, %v1745_v23  ;;  %v644_v57 = vsel %vm3565_vm9, %v639_v31, %v643_v48  ;;  %v1754_v60 = vrot.slane %v1752_v49, 5  ;;  %v1418_v4 = vld [vmem:[#allocation2 + $0x24] sm:$0x1]  ;;  %v552_v10 = vld [vmem:[#allocation2 + $0x30] sm:$0xf]  ;;  %3151 = vmatpush3.bf16.msra.mxu0 %v3336_v62  ;;  %3210 = vmatprep.subr.bf16.mxu1 %v3337_v41 }
  0x37   :  { %v3654_v12 = vrot.slane %v258_v50, 7  ;;  %v269_v61 = vshll.u32 %v3613_v16, 16  ;;  %v658_v63 = vsel %vm3565_vm9, %v653_v40, %v657_v54  ;;  %v3664_v3 = vrot.slane %v266_v25, 7  ;;  %v1676_v19 = vld [vmem:[#allocation2 + $0x30] sm:$0xf]  ;;  %v3338_v47 = vld [vmem:[%s4427_s1 + $0x80] sm:$0xff]  }
  0x38   :  { %v1741_v0 = vsel %vm3565_vm9, %v1736_v43, %v1740_v55  ;;  %v1750_v1 = vrot.slane %v1749_v56, 4  ;;  %v2976_v6 = vcombine.low %v644_v57, %v658_v63  ;;  %v407_v7 = vld [vmem:[#allocation2 + $0x38] sm:$0xf]  ;;  %v3024_v8 = vrot.slane %v1415_v46, 9  ;;  %v90_v27 = vld [vmem:[#allocation2 + $0x60] sm:$0x1]  ;;  %3211 = vmatpush3.bf16.msra.mxu1 %v3338_v47 }
  0x39   :  { %v263_v16 = vor.u32 %v261_v51, %v3654_v12  ;;  %v271_v15 = vor.u32 %v269_v61, %v3664_v3  ;;  %v1485_v18 = vrot.slane %v1416_v52, 5  ;;  %v3025_v23 = vrot.slane %v1417_v58, 9  ;;  %v87_v26 = vld [vmem:[#allocation2 + $0x58] sm:$0x1]  ;;  %v3688_v40 = vld [vmem:[#allocation2 + $0x28] sm:$0xe] }
  0x3a   :  { %v1755_v14 = vsel %vm3565_vm9, %v1750_v1, %v1754_v60  ;;  %v413_v17 = vld [vmem:[#allocation2 + $0x40] sm:$0xf]  ;;  %827 = vrot.lane.b32.xlu0 %v2976_v6, %s3432_s24  ;;  %v1489_v24 = vrot.slane %v1418_v4, 5  ;;  %v129_v31 = vsel %vm3473_vm5, 0, %v128_v29  ;;  %v132_v32 = vsel %vm3473_vm5, 0, %v131_v5  ;;  %v3339_v60 = vld [vmem:[%s4427_s1 + $0x58] sm:$0xff]  }
  0x3b   :  { %v3055_v21 = vcombine.low %v1741_v0, %v1755_v14  ;;  %v408_v22 = vsel %vm3508_vm6, %v263_v16, %v407_v7  ;;  %v414_v28 = vsel %vm3508_vm6, %v271_v15, %v413_v17  ;;  %v1486_v30 = vsel %vm3594_vm12, %v3024_v8, %v1485_v18  ;;  %130 = vst [vmem:[#allocation2 + $0x34] sm:$0x1] %v129_v31  ;;  %v3697_v46 = vld [vmem:[#allocation2 + $0x2c] sm:$0x1]  ;;  %v137_v52 = vld [vmem:[#allocation2 + $0x5c] sm:$0x1] }
  0x3c   :  { %409 = vst [vmem:[#allocation2 + $0x38] sm:$0xf] %v408_v22  ;;  %415 = vst [vmem:[#allocation2 + $0x40] sm:$0xf] %v414_v28  ;;  %v1490_v33 = vsel %vm3594_vm12, %v3025_v23, %v1489_v24  ;;  %v660_v35 = vshrl.u32 %v552_v10, 16  ;;  %v663_v38 = vshll.u32 %v552_v10, 16  ;;  %3152 = vmatprep.subr.bf16.mxu0 %v3339_v60 }
  0x3d   :  { %1950 = vrot.lane.b32.xlu1 %v3055_v21, %s3432_s24  ;;  %133 = vst [vmem:[#allocation2 + $0x3c] sm:$0x1] %v132_v32  ;;  %v1757_v39 = vshrl.u32 %v1676_v19, 16  ;;  %v3039_v42 = vcombine.low %v1486_v30, %v1490_v33  ;;  %v1760_v43 = vshll.u32 %v1676_v19, 16  ;;  %v88_v44 = vsel %vm3463_vm2, 0, %v87_v26  ;;  %v3340_v63 = vld [vmem:[%s4427_s1 + $0x18] sm:$0xff]  }
  0x3e   :  { %v91_v45 = vsel %vm3463_vm2, 0, %v90_v27  ;;  %v256_v48 = vrot.slane %v3540_v13, 4  ;;  %v662_v49 = vrot.slane %v660_v35, 4  ;;  %v665_v50 = vrot.slane %v663_v38, 5  ;;  %89 = vst [vmem:[#allocation2 + $0x58] sm:$0x1] %v88_v44  ;;  %3153 = vmatpush3.bf16.msra.mxu0 %v3340_v63 }
  0x3f   :  { %92 = vst [vmem:[#allocation2 + $0x60] sm:$0x1] %v91_v45  ;;  %v274_v51 = vshrl.u32 %v3667_v11, 16  ;;  %v264_v53 = vrot.slane %v3654_v12, 4  ;;  %v277_v54 = vshll.u32 %v3667_v11, 16  ;;  %v282_v55 = vshrl.u32 %v3672_v20, 16 }
  0x40   :  { %v285_v56 = vshll.u32 %v3672_v20, 16  ;;  %v3708_v25 = vld [vmem:[#allocation2 + $0x30] sm:$0xe]  ;;  %v272_v13 = vrot.slane %v3664_v3, 4  ;;  %v3712_v58 = vrot.slane %v1757_v39, 4  ;;  %v3714_v59 = vrot.slane %v1760_v43, 5 }
  0x41   :  { %1565 = vrot.lane.b32.xlu1 %v3039_v42, %s3432_s24  ;;  %v3716_v57 = vrot.slane %v274_v51, 7  ;;  %v666_v12 = vor.u32 %v665_v50, %v662_v49  ;;  %v3721_v61 = vrot.slane %v282_v55, 7  ;;  %v3026_v29 = vrot.slane %v3688_v40, 9  ;;  %v556_v6 = vld [vmem:[#allocation2 + $0x50] sm:$0xf]  ;;  %v3341_v27 = vld [vmem:[%s4427_s1 + $0xc8] sm:$0xff]  }
  0x42   :  { %v138_v62 = vsel %vm3473_vm5, 0, %v137_v52  ;;  %v1493_v4 = vrot.slane %v3697_v46, 5  ;;  %v3027_v5 = vrot.slane %v3708_v25, 9  ;;  %v404_v7 = vld [vmem:[#allocation2 + $0x34] sm:$0x1]  ;;  %v1763_v20 = vor.u32 %v3714_v59, %v3712_v58  ;;  %v3342_v35 = vld [vmem:[%s4427_s1 + $0x88] sm:$0xff]   ;;  %3212 = vmatprep.subr.bf16.mxu1 %v3341_v27 }
  0x43   :  { %v554_v0 = vld [vmem:[#allocation2 + $0x38] sm:$0xf]  ;;  %v279_v1 = vor.u32 %v277_v54, %v3716_v57  ;;  %139 = vst [vmem:[#allocation2 + $0x5c] sm:$0x1] %v138_v62  ;;  %v287_v8 = vor.u32 %v285_v56, %v3721_v61  ;;  %v557_v10 = vld [vmem:[#allocation2 + $0x54] sm:$0x1]  ;;  %v405_v14 = vsel %vm3463_vm2, %v256_v48, %v404_v7  ;;  %3213 = vmatpush3.bf16.msra.mxu1 %v3342_v35 }
  0x44   :  { %v3326_v16 = vld [vmem:[#allocation2 + $0x38] ss:$8 sps:$4 sm:$0xff]   ;;  %v134_v11 = vld [vmem:[#allocation2 + $0x44] sm:$0x1]  ;;  %v410_v15 = vld [vmem:[#allocation2 + $0x3c] sm:$0x1] }
  0x45   :  { %v674_v17 = vshrl.u32 %v554_v0, 16  ;;  %v677_v18 = vshll.u32 %v554_v0, 16  ;;  %v1678_v19 = vld [vmem:[#allocation2 + $0x38] sm:$0xf]  ;;  %1089 = vrot.lane.b32.xlu0 %v3326_v16, %s3432_s24  ;;  %406 = vst [vmem:[#allocation2 + $0x34] sm:$0x1] %v405_v14  ;;  %v411_v21 = vsel %vm3463_vm2, %v264_v53, %v410_v15 }
  0x46   :  { %v3740_v22 = vrot.slane %v666_v12, 4  ;;  %v1771_v23 = vshrl.u32 %v1678_v19, 16  ;;  %v1774_v24 = vshll.u32 %v1678_v19, 16  ;;  %v419_v26 = vld [vmem:[#allocation2 + $0x58] sm:$0xf]  ;;  %v280_v31 = vrot.slane %v3716_v57, 4 }
  0x47   :  { %412 = vst [vmem:[#allocation2 + $0x3c] sm:$0x1] %v411_v21  ;;  %v676_v28 = vrot.slane %v674_v17, 4  ;;  %v679_v30 = vrot.slane %v677_v18, 5  ;;  %v420_v32 = vsel %vm3508_vm6, %v279_v1, %v419_v26  ;;  %v425_v33 = vld [vmem:[#allocation2 + $0x60] sm:$0xf] }
  0x48   :  { %v1773_v38 = vrot.slane %v1771_v23, 4  ;;  %v1776_v39 = vrot.slane %v1774_v24, 5  ;;  %421 = vst [vmem:[#allocation2 + $0x58] sm:$0xf] %v420_v32  ;;  %v426_v41 = vsel %vm3508_vm6, %v287_v8, %v425_v33  ;;  %v688_v42 = vshrl.u32 %v556_v6, 16  ;;  %v3343_v44 = vld [vmem:[%s4427_s1 + $0x60] sm:$0xff]  }
  0x49   :  { %v1680_v43 = vld [vmem:[#allocation2 + $0x40] sm:$0xf]  ;;  %v680_v45 = vor.u32 %v679_v30, %v676_v28  ;;  %427 = vst [vmem:[#allocation2 + $0x60] sm:$0xf] %v426_v41  ;;  %v691_v47 = vshll.u32 %v556_v6, 16  ;;  %v697_v48 = vshll.u32 %v557_v10, 16  ;;  %3154 = vmatprep.subr.bf16.mxu0 %v3343_v44 }
  0x4a   :  { %v135_v49 = vsel %vm3473_vm5, 0, %v134_v11  ;;  %v26_v50 = vld [vmem:[%s4426_s0 + $0x50] sm:$0xff]  ;;  %v3344_v51 = vld [vmem:[%s4427_s1 + $0x20] sm:$0xff]   ;;  %v422_v52 = vld [vmem:[#allocation2 + $0x5c] sm:$0x1]  ;;  %v690_v53 = vrot.slane %v688_v42, 4  ;;  %v1777_v59 = vor.u32 %v1776_v39, %v1773_v38  ;;  %v1494_v39 = vsel %vm3594_vm12, %v3026_v29, %v1493_v4 }
  0x4b   :  { %136 = vst [vmem:[#allocation2 + $0x44] sm:$0x1] %v135_v49  ;;  %v1785_v54 = vshrl.u32 %v1680_v43, 16  ;;  %v1788_v55 = vshll.u32 %v1680_v43, 16  ;;  %v3345_v56 = vld [vmem:[%s4427_s1 + $0xd0] sm:$0xff]   ;;  %v1764_v58 = vrot.slane %v1763_v20, 4  ;;  %v423_v57 = vsel %vm3463_vm2, %v280_v31, %v422_v52  ;;  %3155 = vmatpush3.bf16.msra.mxu0 %v3344_v51 }
  0x4c   :  { %v693_v60 = vrot.slane %v691_v47, 5  ;;  %v27_v12 = vld [vmem:[%s4426_s0 + $0x58] sm:$0xff]  ;;  %v28_v62 = vld [vmem:[%s4426_s0 + $0x60] sm:$0xff]  ;;  %v3346_v63 = vld [vmem:[%s4427_s1 + $0x90] sm:$0xff]   ;;  %v681_v0 = vrot.slane %v680_v45, 4  ;;  %v3778_v1 = vrot.slane %v697_v48, 5  ;;  %3214 = vmatprep.subr.bf16.mxu1 %v3345_v56  ;;  %v3786_v15 = vpack.c.bf16 %v26_v50, %v26_v50 }
  0x4d   :  { %424 = vst [vmem:[#allocation2 + $0x5c] sm:$0x1] %v423_v57  ;;  %v3780_v6 = vld [vmem:[#allocation2 + $0x48] sm:$0xf]  ;;  %v3782_v16 = vrot.slane %v1785_v54, 4  ;;  %v3784_v7 = vrot.slane %v1788_v55, 5  ;;  %3215 = vmatpush3.bf16.msra.mxu1 %v3346_v63  ;;  %v3788_v21 = vpack.c.bf16 %v27_v12, %v27_v12  ;;  %v3790_v23 = vpack.c.bf16 %v28_v62, %v28_v62 }
  0x4e   :  { %v553_v8 = vld [vmem:[#allocation2 + $0x34] sm:$0x1]  ;;  %v694_v14 = vor.u32 %v693_v60, %v690_v53  ;;  %v555_v17 = vld [vmem:[#allocation2 + $0x3c] sm:$0x1]  ;;  %v1778_v26 = vrot.slane %v1777_v59, 4  ;;  %v1799_v33 = vshrl.u32 %v3780_v6, 16 }
  0x4f   :  { %v1677_v10 = vld [vmem:[#allocation2 + $0x34] sm:$0x1]  ;;  %v669_v18 = vshll.u32 %v553_v8, 16  ;;  %v1679_v19 = vld [vmem:[#allocation2 + $0x3c] sm:$0x1]  ;;  %v683_v24 = vshll.u32 %v555_v17, 16  ;;  %v1791_v43 = vor.u32 %v3784_v7, %v3782_v16 }
  0x50   :  { %v1422_v11 = vld [vmem:[#allocation2 + $0x34] sm:$0x1]  ;;  %v1766_v20 = vshll.u32 %v1677_v10, 16  ;;  %v1780_v27 = vshll.u32 %v1679_v19, 16  ;;  %v3792_v32 = vrot.slane %v694_v14, 4  ;;  %v3347_v4 = vld [vmem:[%s4427_s1 + $0x68] sm:$0xff]  }
  0x51   :  { %v1497_v28 = vrot.slane %v1422_v11, 5  ;;  %v671_v30 = vrot.slane %v669_v18, 5  ;;  %v685_v35 = vrot.slane %v683_v24, 5  ;;  %v558_v41 = vld [vmem:[#allocation2 + $0x58] sm:$0xf]  ;;  %v3348_v51 = vld [vmem:[%s4427_s1 + $0x28] sm:$0xff]   ;;  %3156 = vmatprep.subr.bf16.mxu0 %v3347_v4 }
  0x52   :  { %v1768_v31 = vrot.slane %v1766_v20, 5  ;;  %v1782_v38 = vrot.slane %v1780_v27, 5  ;;  %v416_v42 = vld [vmem:[#allocation2 + $0x44] sm:$0x1]  ;;  %v702_v46 = vshrl.u32 %v558_v41, 16  ;;  %v705_v50 = vshll.u32 %v558_v41, 16  ;;  %3157 = vmatpush3.bf16.msra.mxu0 %v3348_v51 }
  0x53   :  { %v672_v44 = vsel %vm3565_vm9, %v3740_v22, %v671_v30  ;;  %v1498_v40 = vsel %vm3594_vm12, %v3027_v5, %v1497_v28  ;;  %v1683_v47 = vld [vmem:[#allocation2 + $0x4c] sm:$0x1]  ;;  %v93_v29 = vld [vmem:[#allocation2 + $0x68] sm:$0x1]  ;;  %v686_v48 = vsel %vm3565_vm9, %v681_v0, %v685_v35  ;;  %v417_v25 = vsel %vm3463_vm2, %v272_v13, %v416_v42  ;;  %v96_v5 = vld [vmem:[#allocation2 + $0x70] sm:$0x1] }
  0x54   :  { %v1769_v45 = vsel %vm3565_vm9, %v1764_v58, %v1768_v31  ;;  %v1783_v22 = vsel %vm3565_vm9, %v1778_v26, %v1782_v38  ;;  %v559_v49 = vld [vmem:[#allocation2 + $0x5c] sm:$0x1]  ;;  %v2977_v52 = vcombine.low %v672_v44, %v686_v48  ;;  %v704_v54 = vrot.slane %v702_v46, 4  ;;  %418 = vst [vmem:[#allocation2 + $0x44] sm:$0x1] %v417_v25  ;;  %v29_v46 = vld [vmem:[%s4426_s0 + $0x68] sm:$0xff] }
  0x55   :  { %v3056_v53 = vcombine.low %v1769_v45, %v1783_v22  ;;  %v711_v55 = vshll.u32 %v559_v49, 16  ;;  %v3040_v56 = vcombine.low %v1494_v39, %v1498_v40  ;;  %v707_v58 = vrot.slane %v705_v50, 5  ;;  %v3827_v3 = vld [vmem:[#allocation2 + $0x38] sm:$0xe]  ;;  %v140_v60 = vld [vmem:[#allocation2 + $0x64] sm:$0x1] }
  0x56   :  { %v1801_v59 = vrot.slane %v1799_v33, 4  ;;  %v1802_v57 = vshll.u32 %v3780_v6, 16  ;;  %v143_v13 = vld [vmem:[#allocation2 + $0x6c] sm:$0x1]  ;;  %829 = vrot.lane.b32.xlu0 %v2977_v52, %s3432_s24  ;;  %v3327_v12 = vld [vmem:[#allocation2 + $0x58] ss:$8 sps:$4 sm:$0xff]   ;;  %v700_v19 = vsel %vm3565_vm9, %v3792_v32, %v3778_v1 }
  0x57   :  { %1952 = vrot.lane.b32.xlu1 %v3056_v53, %s3432_s24  ;;  %v713_v62 = vrot.slane %v711_v55, 5  ;;  %v1808_v63 = vshll.u32 %v1683_v47, 16  ;;  %v94_v0 = vsel %vm3463_vm2, 0, %v93_v29  ;;  %v97_v8 = vsel %vm3463_vm2, 0, %v96_v5  ;;  %v1424_v17 = vld [vmem:[#allocation2 + $0x3c] sm:$0x1] }
  0x58   :  { %v708_v10 = vor.u32 %v707_v58, %v704_v54  ;;  %v1804_v6 = vrot.slane %v1802_v57, 5  ;;  %95 = vst [vmem:[#allocation2 + $0x68] sm:$0x1] %v94_v0  ;;  %98 = vst [vmem:[#allocation2 + $0x70] sm:$0x1] %v97_v8  ;;  %v290_v11 = vshrl.u32 %v3786_v15, 16 }
  0x59   :  { %v293_v14 = vshll.u32 %v3786_v15, 16  ;;  %v3349_v18 = vld [vmem:[%s4427_s1 + $0xd8] sm:$0xff]   ;;  %v1810_v20 = vrot.slane %v1808_v63, 5  ;;  %v298_v24 = vshrl.u32 %v3788_v21, 16  ;;  %v301_v26 = vshll.u32 %v3788_v21, 16  ;;  %v3351_v57 = vld [vmem:[%s4427_s1 + $0x70] sm:$0xff]  }
  0x5a   :  { %v1425_v27 = vld [vmem:[#allocation2 + $0x40] sm:$0xe]  ;;  %v709_v28 = vrot.slane %v708_v10, 4  ;;  %v1805_v30 = vor.u32 %v1804_v6, %v1801_v59  ;;  %v3846_v31 = vrot.slane %v290_v11, 7  ;;  %v3028_v15 = vrot.slane %v3827_v3, 9  ;;  %3216 = vmatprep.subr.bf16.mxu1 %v3349_v18  ;;  %v3350_v33 = vld [vmem:[%s4427_s1 + $0x98] sm:$0xff]   ;;  %1091 = vrot.lane.b32.xlu0 %v3327_v12, %s3432_s24 }
  0x5b   :  { %1567 = vrot.lane.b32.xlu1 %v3040_v56, %s3432_s24  ;;  %v3854_v1 = vrot.slane %v298_v24, 7  ;;  %v1501_v32 = vrot.slane %v1424_v17, 5  ;;  %v141_v21 = vsel %vm3473_vm5, 0, %v140_v60  ;;  %v144_v35 = vsel %vm3473_vm5, 0, %v143_v13  ;;  %v560_v38 = vld [vmem:[#allocation2 + $0x60] sm:$0xf]  ;;  %3217 = vmatpush3.bf16.msra.mxu1 %v3350_v33 }
  0x5c   :  { %v714_v39 = vsel %vm3565_vm9, %v709_v28, %v713_v62  ;;  %v1681_v41 = vld [vmem:[#allocation2 + $0x44] sm:$0x1]  ;;  %v1806_v42 = vrot.slane %v1805_v30, 4  ;;  %v295_v44 = vor.u32 %v293_v14, %v3846_v31  ;;  %v3029_v40 = vrot.slane %v1425_v27, 9  ;;  %142 = vst [vmem:[#allocation2 + $0x64] sm:$0x1] %v141_v21  ;;  %3158 = vmatprep.subr.bf16.mxu0 %v3351_v57 }
  0x5d   :  { %v1426_v45 = vld [vmem:[#allocation2 + $0x44] sm:$0x1]  ;;  %145 = vst [vmem:[#allocation2 + $0x6c] sm:$0x1] %v144_v35  ;;  %v2978_v47 = vcombine.low %v700_v19, %v714_v39  ;;  %v1792_v29 = vrot.slane %v1791_v43, 4  ;;  %v1794_v4 = vshll.u32 %v1681_v41, 16  ;;  %v303_v48 = vor.u32 %v301_v26, %v3854_v1 }
  0x5e   :  { %v1684_v22 = vld [vmem:[#allocation2 + $0x60] sm:$0xf]  ;;  %v99_v49 = vld [vmem:[#allocation2 + $0x78] sm:$0x1]  ;;  %v288_v25 = vrot.slane %v3721_v61, 4  ;;  %v296_v5 = vrot.slane %v3846_v31, 4  ;;  %v1811_v54 = vsel %vm3565_vm9, %v1806_v42, %v1810_v20  ;;  %v1502_v43 = vsel %vm3594_vm12, %v3028_v15, %v1501_v32 }
  0x5f   :  { %v102_v50 = vld [vmem:[#allocation2 + $0x80] sm:$0x1]  ;;  %v1505_v51 = vrot.slane %v1426_v45, 5  ;;  %v716_v52 = vshrl.u32 %v560_v38, 16  ;;  %831 = vrot.lane.b32.xlu0 %v2978_v47, %s3432_s24  ;;  %v1796_v53 = vrot.slane %v1794_v4, 5  ;;  %v719_v55 = vshll.u32 %v560_v38, 16 }
  0x60   :  { %v431_v16 = vld [vmem:[#allocation2 + $0x68] sm:$0xf]  ;;  %v437_v7 = vld [vmem:[#allocation2 + $0x70] sm:$0xf]  ;;  %v1813_v13 = vshrl.u32 %v1684_v22, 16  ;;  %v3143_v12 = vpack.c.bf16 %v29_v46, %v29_v46  ;;  %v1816_v0 = vshll.u32 %v1684_v22, 16 }
  0x61   :  { %v432_v56 = vsel %vm3508_vm6, %v295_v44, %v431_v16  ;;  %v438_v61 = vsel %vm3508_vm6, %v303_v48, %v437_v7  ;;  %v1506_v58 = vsel %vm3594_vm12, %v3029_v40, %v1505_v51  ;;  %v718_v59 = vrot.slane %v716_v52, 4  ;;  %v3888_v62 = vld [vmem:[#allocation2 + $0x58] sm:$0xe]  ;;  %v3894_v6 = vld [vmem:[#allocation2 + $0x5c] sm:$0x1]  ;;  %v3354_v14 = vld [vmem:[%s4427_s1 + $0x30] sm:$0xff]  }
  0x62   :  { %v1797_v3 = vsel %vm3565_vm9, %v1792_v29, %v1796_v53  ;;  %433 = vst [vmem:[#allocation2 + $0x68] sm:$0xf] %v432_v56  ;;  %439 = vst [vmem:[#allocation2 + $0x70] sm:$0xf] %v438_v61  ;;  %v721_v60 = vrot.slane %v719_v55, 5  ;;  %v100_v8 = vsel %vm3463_vm2, 0, %v99_v49  ;;  %v3041_v17 = vcombine.low %v1502_v43, %v1506_v58  ;;  %3159 = vmatpush3.bf16.msra.mxu0 %v3354_v14 }
  0x63   :  { %v3057_v63 = vcombine.low %v1797_v3, %v1811_v54  ;;  %v103_v10 = vsel %vm3463_vm2, 0, %v102_v50  ;;  %v146_v11 = vld [vmem:[#allocation2 + $0x74] sm:$0x1]  ;;  %v428_v18 = vld [vmem:[#allocation2 + $0x64] sm:$0x1]  ;;  %v1815_v24 = vrot.slane %v1813_v13, 4 }
  0x64   :  { %v434_v19 = vld [vmem:[#allocation2 + $0x6c] sm:$0x1]  ;;  %v722_v20 = vor.u32 %v721_v60, %v718_v59  ;;  %101 = vst [vmem:[#allocation2 + $0x78] sm:$0x1] %v100_v8  ;;  %104 = vst [vmem:[#allocation2 + $0x80] sm:$0x1] %v103_v10  ;;  %v429_v27 = vsel %vm3463_vm2, %v288_v25, %v428_v18 }
  0x65   :  { %v306_v26 = vshrl.u32 %v3790_v23, 16  ;;  %1954 = vrot.lane.b32.xlu1 %v3057_v63, %s3432_s24  ;;  %v435_v28 = vsel %vm3463_vm2, %v296_v5, %v434_v19  ;;  %v1818_v30 = vrot.slane %v1816_v0, 5  ;;  %v309_v31 = vshll.u32 %v3790_v23, 16  ;;  %v3906_v15 = vld [vmem:[#allocation2 + $0x60] sm:$0xe] }
  0x66   :  { %430 = vst [vmem:[#allocation2 + $0x64] sm:$0x1] %v429_v27  ;;  %436 = vst [vmem:[#allocation2 + $0x6c] sm:$0x1] %v435_v28  ;;  %v314_v32 = vshrl.u32 %v3143_v12, 16  ;;  %v317_v21 = vshll.u32 %v3143_v12, 16 }
  0x67   :  { %v3908_v33 = vrot.slane %v306_v26, 7  ;;  %v304_v35 = vrot.slane %v3854_v1, 4  ;;  %v3911_v38 = vrot.slane %v722_v20, 4  ;;  %v1819_v39 = vor.u32 %v1818_v30, %v1815_v24  ;;  %v149_v42 = vld [vmem:[#allocation2 + $0x7c] sm:$0x1]  ;;  %v3355_v23 = vld [vmem:[%s4427_s1 + $0xe0] sm:$0xff]  }
  0x68   :  { %v3030_v41 = vrot.slane %v3888_v62, 9  ;;  %v105_v44 = vld [vmem:[#allocation2 + $0x88] sm:$0x1]  ;;  %v3918_v40 = vrot.slane %v314_v32, 7  ;;  %v1509_v46 = vrot.slane %v3894_v6, 5  ;;  %v147_v47 = vsel %vm3473_vm5, 0, %v146_v11  ;;  %3218 = vmatprep.subr.bf16.mxu1 %v3355_v23 }
  0x69   :  { %v311_v45 = vor.u32 %v309_v31, %v3908_v33  ;;  %v3356_v29 = vld [vmem:[%s4427_s1 + $0xa0] sm:$0xff]   ;;  %v3328_v4 = vld [vmem:[#allocation2 + $0x68] ss:$8 sps:$4 sm:$0xff]   ;;  %1569 = vrot.lane.b32.xlu1 %v3041_v17, %s3432_s24  ;;  %148 = vst [vmem:[#allocation2 + $0x74] sm:$0x1] %v147_v47  ;;  %v312_v49 = vrot.slane %v3908_v33, 4 }
  0x6a   :  { %v562_v48 = vld [vmem:[#allocation2 + $0x68] sm:$0xf]  ;;  %v319_v50 = vor.u32 %v317_v21, %v3918_v40  ;;  %v3031_v25 = vrot.slane %v3906_v15, 9  ;;  %3219 = vmatpush3.bf16.msra.mxu1 %v3356_v29  ;;  %1093 = vrot.lane.b32.xlu0 %v3328_v4, %s3432_s24  ;;  %v1820_v16 = vrot.slane %v1819_v39, 4  ;;  %v150_v55 = vsel %vm3473_vm5, 0, %v149_v42  ;;  %v3357_v17 = vld [vmem:[%s4427_s1 + $0x78] sm:$0xff]  }
  0x6b   :  { %v1686_v22 = vld [vmem:[#allocation2 + $0x68] sm:$0xf]  ;;  %v730_v5 = vshrl.u32 %v562_v48, 16  ;;  %v733_v51 = vshll.u32 %v562_v48, 16  ;;  %v443_v54 = vld [vmem:[#allocation2 + $0x78] sm:$0xf]  ;;  %v3941_v0 = vsel %vm3594_vm12, %v3030_v41, %v1509_v46  ;;  %3160 = vmatprep.subr.bf16.mxu0 %v3357_v17 }
  0x6c   :  { %v1827_v52 = vshrl.u32 %v1686_v22, 16  ;;  %v1830_v53 = vshll.u32 %v1686_v22, 16  ;;  %v444_v7 = vsel %vm3508_vm6, %v311_v45, %v443_v54  ;;  %v449_v43 = vld [vmem:[#allocation2 + $0x80] sm:$0xf]  ;;  %v106_v56 = vsel %vm3463_vm2, 0, %v105_v44  ;;  %v30_v15 = vld [vmem:[%s4426_s0 + $0x70] sm:$0xff] }
  0x6d   :  { %v561_v61 = vld [vmem:[#allocation2 + $0x64] sm:$0x1]  ;;  %v563_v58 = vld [vmem:[#allocation2 + $0x6c] sm:$0x1]  ;;  %v732_v59 = vrot.slane %v730_v5, 4  ;;  %v735_v57 = vrot.slane %v733_v51, 5  ;;  %v450_v3 = vsel %vm3508_vm6, %v319_v50, %v449_v43  ;;  %v3969_v48 = vpack.c.bf16 %v30_v15, %v30_v15 }
  0x6e   :  { %445 = vst [vmem:[#allocation2 + $0x78] sm:$0xf] %v444_v7  ;;  %151 = vst [vmem:[#allocation2 + $0x7c] sm:$0x1] %v150_v55  ;;  %v564_v60 = vld [vmem:[#allocation2 + $0x70] sm:$0xf] }
  0x6f   :  { %107 = vst [vmem:[#allocation2 + $0x88] sm:$0x1] %v106_v56  ;;  %v725_v13 = vshll.u32 %v561_v61, 16  ;;  %v739_v12 = vshll.u32 %v563_v58, 16  ;;  %v1685_v62 = vld [vmem:[#allocation2 + $0x64] sm:$0x1]  ;;  %v736_v8 = vor.u32 %v735_v57, %v732_v59 }
  0x70   :  { %v1687_v63 = vld [vmem:[#allocation2 + $0x6c] sm:$0x1]  ;;  %451 = vst [vmem:[#allocation2 + $0x80] sm:$0xf] %v450_v3  ;;  %v1822_v10 = vshll.u32 %v1685_v62, 16  ;;  %v1829_v6 = vrot.slane %v1827_v52, 4 }
  0x71   :  { %v1832_v11 = vrot.slane %v1830_v53, 5  ;;  %v1430_v14 = vld [vmem:[#allocation2 + $0x64] sm:$0x1]  ;;  %v727_v18 = vrot.slane %v725_v13, 5  ;;  %v741_v19 = vrot.slane %v739_v12, 5  ;;  %v1836_v20 = vshll.u32 %v1687_v63, 16 }
  0x72   :  { %v1513_v24 = vrot.slane %v1430_v14, 5  ;;  %v440_v26 = vld [vmem:[#allocation2 + $0x74] sm:$0x1]  ;;  %v737_v27 = vrot.slane %v736_v8, 4  ;;  %v1824_v28 = vrot.slane %v1822_v10, 5  ;;  %v744_v41 = vshrl.u32 %v564_v60, 16 }
  0x73   :  { %v1833_v30 = vor.u32 %v1832_v11, %v1829_v6  ;;  %v441_v31 = vsel %vm3463_vm2, %v304_v35, %v440_v26  ;;  %v728_v32 = vsel %vm3565_vm9, %v3911_v38, %v727_v18  ;;  %v1838_v21 = vrot.slane %v1836_v20, 5  ;;  %v1688_v42 = vld [vmem:[#allocation2 + $0x70] sm:$0xf]  ;;  %v3359_v45 = vld [vmem:[%s4427_s1 + $0x38] sm:$0xff]   ;;  %v3360_v43 = vld [vmem:[%s4427_s1 + $0xe8] sm:$0xff]  }
  0x74   :  { %v1514_v39 = vsel %vm3594_vm12, %v3031_v25, %v1513_v24  ;;  %442 = vst [vmem:[#allocation2 + $0x74] sm:$0x1] %v441_v31  ;;  %v742_v1 = vsel %vm3565_vm9, %v737_v27, %v741_v19  ;;  %v1825_v35 = vsel %vm3565_vm9, %v1820_v16, %v1824_v28  ;;  %v108_v23 = vld [vmem:[#allocation2 + $0x90] sm:$0x1]  ;;  %v31_v4 = vld [vmem:[%s4426_s0 + $0x78] sm:$0xff]  ;;  %v746_v5 = vrot.slane %v744_v41, 4  ;;  %3161 = vmatpush3.bf16.msra.mxu0 %v3359_v45 }
  0x75   :  { %v1834_v44 = vrot.slane %v1833_v30, 4  ;;  %v2979_v38 = vcombine.low %v728_v32, %v742_v1  ;;  %v3042_v46 = vcombine.low %v3941_v0, %v1514_v39  ;;  %v446_v47 = vld [vmem:[#allocation2 + $0x7c] sm:$0x1]  ;;  %v566_v29 = vld [vmem:[#allocation2 + $0x78] sm:$0xf]  ;;  %v747_v51 = vshll.u32 %v564_v60, 16  ;;  %3220 = vmatprep.subr.bf16.mxu1 %v3360_v43 }
  0x76   :  { %v447_v25 = vsel %vm3463_vm2, %v312_v49, %v446_v47  ;;  %v758_v53 = vshrl.u32 %v566_v29, 16  ;;  %v761_v54 = vshll.u32 %v566_v29, 16  ;;  %v1690_v16 = vld [vmem:[#allocation2 + $0x78] sm:$0xf]  ;;  %v1841_v7 = vshrl.u32 %v1688_v42, 16  ;;  %v3361_v11 = vld [vmem:[%s4427_s1 + $0xa8] sm:$0xff]  }
  0x77   :  { %v1839_v22 = vsel %vm3565_vm9, %v1834_v44, %v1838_v21  ;;  %v3329_v50 = vld [vmem:[#allocation2 + $0x78] ss:$8 sps:$4 sm:$0xff]   ;;  %833 = vrot.lane.b32.xlu0 %v2979_v38, %s3432_s24  ;;  %448 = vst [vmem:[#allocation2 + $0x7c] sm:$0x1] %v447_v25  ;;  %v749_v55 = vrot.slane %v747_v51, 5  ;;  %v1844_v33 = vshll.u32 %v1688_v42, 16  ;;  %v3984_v63 = vpack.c.bf16 %v31_v4, %v31_v4  ;;  %3221 = vmatpush3.bf16.msra.mxu1 %v3361_v11 }
  0x78   :  { %v3058_v52 = vcombine.low %v1825_v35, %v1839_v22  ;;  %v1855_v56 = vshrl.u32 %v1690_v16, 16  ;;  %v1858_v61 = vshll.u32 %v1690_v16, 16  ;;  %v760_v49 = vrot.slane %v758_v53, 4  ;;  %v1431_v20 = vld [vmem:[#allocation2 + $0x68] sm:$0xe]  ;;  %v3995_v24 = vld [vmem:[%s4427_s1 + $0x100] sm:$0xff]  }
  0x79   :  { %v763_v58 = vrot.slane %v761_v54, 5  ;;  %v1843_v59 = vrot.slane %v1841_v7, 4  ;;  %v109_v57 = vsel %vm3463_vm2, 0, %v108_v23  ;;  %v750_v60 = vor.u32 %v749_v55, %v746_v5  ;;  %v455_v31 = vld [vmem:[#allocation2 + $0x88] sm:$0xf]  ;;  %v3363_v21 = vld [vmem:[%s4427_s1 + $0xf0] sm:$0xff]   ;;  %3286 = vmatprep.subr.bf16.mxu0 %v3995_v24 }
  0x7a   :  { %1956 = vrot.lane.b32.xlu1 %v3058_v52, %s3432_s24  ;;  %v1846_v12 = vrot.slane %v1844_v33, 5  ;;  %v1857_v62 = vrot.slane %v1855_v56, 4  ;;  %110 = vst [vmem:[#allocation2 + $0x90] sm:$0x1] %v109_v57  ;;  %v1860_v6 = vrot.slane %v1858_v61, 5  ;;  %v322_v18 = vshrl.u32 %v3969_v48, 16  ;;  %3222 = vmatprep.subr.bf16.mxu1 %v3363_v21 }
  0x7b   :  { %v565_v3 = vld [vmem:[#allocation2 + $0x74] sm:$0x1]  ;;  %1095 = vrot.lane.b32.xlu0 %v3329_v50, %s3432_s24  ;;  %v764_v8 = vor.u32 %v763_v58, %v760_v49  ;;  %v751_v14 = vrot.slane %v750_v60, 4  ;;  %v325_v19 = vshll.u32 %v3969_v48, 16  ;;  %v320_v26 = vrot.slane %v3918_v40, 4  ;;  %v3367_v56 = vld [vmem:[%s4427_s1 + $0xf8] sm:$0xff]  }
  0x7c   :  { %v1689_v13 = vld [vmem:[#allocation2 + $0x74] sm:$0x1]  ;;  %v753_v0 = vshll.u32 %v565_v3, 16  ;;  %v1847_v17 = vor.u32 %v1846_v12, %v1843_v59  ;;  %v1861_v30 = vor.u32 %v1860_v6, %v1857_v62  ;;  %v1432_v15 = vld [vmem:[#allocation2 + $0x6c] sm:$0x1]  ;;  %v4002_v1 = vrot.slane %v322_v18, 7 }
  0x7d   :  { %v1850_v10 = vshll.u32 %v1689_v13, 16  ;;  %v1433_v32 = vld [vmem:[#allocation2 + $0x70] sm:$0xe]  ;;  %v152_v35 = vld [vmem:[#allocation2 + $0x84] sm:$0x1]  ;;  %v765_v44 = vrot.slane %v764_v8, 4 }
  0x7e   :  { %1571 = vrot.lane.b32.xlu1 %v3042_v46, %s3432_s24  ;;  %v755_v27 = vrot.slane %v753_v0, 5  ;;  %v567_v39 = vld [vmem:[#allocation2 + $0x7c] sm:$0x1]  ;;  %v1848_v42 = vrot.slane %v1847_v17, 4  ;;  %v1862_v45 = vrot.slane %v1861_v30, 4  ;;  %v3364_v46 = vld [vmem:[%s4427_s1 + $0xb0] sm:$0xff]   ;;  %v327_v4 = vor.u32 %v325_v19, %v4002_v1 }
  0x7f   :  { %v1852_v28 = vrot.slane %v1850_v10, 5  ;;  %v1691_v41 = vld [vmem:[#allocation2 + $0x7c] sm:$0x1]  ;;  %v767_v23 = vshll.u32 %v567_v39, 16  ;;  %v330_v48 = vshrl.u32 %v3984_v63, 16  ;;  %v333_v52 = vshll.u32 %v3984_v63, 16  ;;  %3223 = vmatpush3.bf16.msra.mxu1 %v3364_v46 }
  0x80   :  { %v1864_v38 = vshll.u32 %v1691_v41, 16  ;;  %v756_v47 = vsel %vm3565_vm9, %v751_v14, %v755_v27  ;;  %v1434_v22 = vld [vmem:[#allocation2 + $0x74] sm:$0x1]  ;;  %v155_v50 = vld [vmem:[#allocation2 + $0x8c] sm:$0x1]  ;;  %v3032_v54 = vrot.slane %v1431_v20, 9  ;;  %v456_v43 = vsel %vm3508_vm6, %v327_v4, %v455_v31  ;;  %3224 = vmatprep.subr.bf16.mxu1 %v3367_v56 }
  0x81   :  { %v1853_v29 = vsel %vm3565_vm9, %v1848_v42, %v1852_v28  ;;  %v568_v25 = vld [vmem:[#allocation2 + $0x80] sm:$0xf]  ;;  %v769_v5 = vrot.slane %v767_v23, 5  ;;  %v461_v53 = vld [vmem:[#allocation2 + $0x90] sm:$0xf]  ;;  %v4015_v7 = vrot.slane %v330_v48, 7 }
  0x82   :  { %v1866_v51 = vrot.slane %v1864_v38, 5  ;;  %v1692_v16 = vld [vmem:[#allocation2 + $0x80] sm:$0xf]  ;;  %v1517_v55 = vrot.slane %v1432_v15, 5  ;;  %v3033_v33 = vrot.slane %v1433_v32, 9  ;;  %v1521_v58 = vrot.slane %v1434_v22, 5 }
  0x83   :  { %v770_v61 = vsel %vm3565_vm9, %v765_v44, %v769_v5  ;;  %457 = vst [vmem:[#allocation2 + $0x88] sm:$0xf] %v456_v43  ;;  %v153_v59 = vsel %vm3473_vm5, 0, %v152_v35  ;;  %v158_v57 = vld [vmem:[#allocation2 + $0x94] sm:$0x1]  ;;  %v328_v13 = vrot.slane %v4002_v1, 4  ;;  %v335_v12 = vor.u32 %v333_v52, %v4015_v7 }
  0x84   :  { %v1867_v49 = vsel %vm3565_vm9, %v1862_v45, %v1866_v51  ;;  %v2980_v3 = vcombine.low %v756_v47, %v770_v61  ;;  %154 = vst [vmem:[#allocation2 + $0x84] sm:$0x1] %v153_v59  ;;  %v4030_v62 = vld [vmem:[#allocation2 + $0x78] sm:$0xe]  ;;  %v1518_v8 = vsel %vm3594_vm12, %v3032_v54, %v1517_v55  ;;  %v1522_v10 = vsel %vm3594_vm12, %v3033_v33, %v1521_v58  ;;  %v4045_v28 = vld [vmem:[#allocation2 + $0x7c] sm:$0x1] }
  0x85   :  { %v3059_v60 = vcombine.low %v1853_v29, %v1867_v49  ;;  %v1698_v63 = vld [vmem:[#allocation2 + $0x98] sm:$0xf]  ;;  %v156_v6 = vsel %vm3473_vm5, 0, %v155_v50  ;;  %v772_v11 = vshrl.u32 %v568_v25, 16  ;;  %v462_v14 = vsel %vm3508_vm6, %v335_v12, %v461_v53  ;;  %v4047_v30 = vld [vmem:[#allocation2 + $0x80] sm:$0xe] }
  0x86   :  { %v3368_v0 = vld [vmem:[%s4427_s1 + $0xb8] sm:$0xff]   ;;  %835 = vrot.lane.b32.xlu0 %v2980_v3, %s3432_s24  ;;  %v3043_v17 = vcombine.low %v1518_v8, %v1522_v10  ;;  %157 = vst [vmem:[#allocation2 + $0x8c] sm:$0x1] %v156_v6  ;;  %v775_v18 = vshll.u32 %v568_v25, 16  ;;  %v1869_v19 = vshrl.u32 %v1692_v16, 16  ;;  %v1872_v27 = vshll.u32 %v1692_v16, 16 }
  0x87   :  { %1958 = vrot.lane.b32.xlu1 %v3059_v60, %s3432_s24  ;;  %463 = vst [vmem:[#allocation2 + $0x90] sm:$0xf] %v462_v14  ;;  %v774_v20 = vrot.slane %v772_v11, 4  ;;  %3225 = vmatpush3.bf16.msra.mxu1 %v3368_v0  ;;  %v336_v31 = vrot.slane %v4015_v7, 4  ;;  %v159_v37 = vsel %vm3473_vm5, 0, %v158_v57  ;;  %v3034_v39 = vrot.slane %v4030_v62, 9 }
  0x88   :  { %v777_v15 = vrot.slane %v775_v18, 5  ;;  %v1871_v32 = vrot.slane %v1869_v19, 4  ;;  %3310 = vmatprep.subr.bf16.mxu1 %v3995_v24  ;;  %v1874_v21 = vrot.slane %v1872_v27, 5  ;;  %160 = vst [vmem:[#allocation2 + $0x94] sm:$0x1] %v159_v37  ;;  %v1911_v41 = vshrl.u32 %v1698_v63, 16 }
  0x89   :  { %v1914_v42 = vshll.u32 %v1698_v63, 16  ;;  %v1699_v23 = vld [vmem:[#allocation2 + $0x9c] sm:$0x1]  ;;  %v1525_v48 = vrot.slane %v4045_v28, 5  ;;  %v3035_v22 = vrot.slane %v4047_v30, 9  ;;  %vm531_vm13 = vcmask 523264  }
  0x8a   :  { %v570_v1 = vld [vmem:[#allocation2 + $0x88] sm:$0xf]  ;;  %v778_v35 = vor.u32 %v777_v15, %v774_v20  ;;  %v1875_v47 = vor.u32 %v1874_v21, %v1871_v32  ;;  %v1913_v53 = vrot.slane %v1911_v41, 4  ;;  %v1920_v56 = vshll.u32 %v1699_v23, 16 }
  0x8b   :  { %1573 = vrot.lane.b32.xlu1 %v3043_v17, %s3432_s24  ;;  %v1694_v44 = vld [vmem:[#allocation2 + $0x88] sm:$0xf]  ;;  %v452_v45 = vld [vmem:[#allocation2 + $0x84] sm:$0x1]  ;;  %v786_v38 = vshrl.u32 %v570_v1, 16  ;;  %v789_v46 = vshll.u32 %v570_v1, 16  ;;  %v1526_v28 = vsel %vm3594_vm12, %v3034_v39, %v1525_v48 }
  0x8c   :  { %v1883_v9 = vshrl.u32 %v1694_v44, 16  ;;  %v453_v29 = vsel %vm3463_vm2, %v320_v26, %v452_v45  ;;  %v1886_v4 = vshll.u32 %v1694_v44, 16  ;;  %v4061_v50 = vld [vmem:[#allocation2 + $0x88] sm:$0xe]  ;;  %v1916_v7 = vrot.slane %v1914_v42, 5 }
  0x8d   :  { %454 = vst [vmem:[#allocation2 + $0x84] sm:$0x1] %v453_v29  ;;  %v458_v25 = vld [vmem:[#allocation2 + $0x8c] sm:$0x1]  ;;  %v788_v5 = vrot.slane %v786_v38, 4  ;;  %v791_v51 = vrot.slane %v789_v46, 5 }
  0x8e   :  { %v1885_v52 = vrot.slane %v1883_v9, 4  ;;  %v3330_v54 = vld [vmem:[#allocation2 + $0x88] ss:$8 sps:$4 sm:$0xff]   ;;  %v459_v40 = vsel %vm3463_vm2, %v328_v13, %v458_v25  ;;  %v1888_v16 = vrot.slane %v1886_v4, 5  ;;  %v779_v26 = vrot.slane %v778_v35, 4 }
  0x8f   :  { %460 = vst [vmem:[#allocation2 + $0x8c] sm:$0x1] %v459_v40  ;;  %v792_v43 = vor.u32 %v791_v51, %v788_v5  ;;  %v4065_v55 = vrot.slane %v1875_v47, 4  ;;  %v1696_v33 = vld [vmem:[#allocation2 + $0x90] sm:$0xf]  ;;  %1097 = vrot.lane.b32.xlu0 %v3330_v54, %s3432_s24  ;;  %v1917_v3 = vor.u32 %v1916_v7, %v1913_v53  ;;  %v3036_v13 = vrot.slane %v4061_v50, 9  ;;  %v1086_v7 = vpop.permute.xlu1 %1085 }
  0x90   :  { %v464_v61 = vld [vmem:[#allocation2 + $0x94] sm:$0x1]  ;;  %v1897_v49 = vshrl.u32 %v1696_v33, 16  ;;  %v1900_v58 = vshll.u32 %v1696_v33, 16  ;;  %v1889_v59 = vor.u32 %v1888_v16, %v1885_v52  ;;  %v1441_v60 = vld [vmem:[#allocation2 + $0x90] sm:$0xe] }
  0x91   :  { %v465_v57 = vsel %vm3463_vm2, %v336_v31, %v464_v61  ;;  %v793_v12 = vrot.slane %v792_v43, 4  ;;  %v4071_v0 = vrot.slane %v1920_v56, 5  ;;  %v3037_v19 = vrot.slane %v1441_v60, 9  ;;  %v863_v35 = vld [vmem:[#allocation2 + $0x1c] sm:$0x1] }
  0x92   :  { %466 = vst [vmem:[#allocation2 + $0x94] sm:$0x1] %v465_v57  ;;  %v1899_v62 = vrot.slane %v1897_v49, 4  ;;  %v1902_v63 = vrot.slane %v1900_v58, 5  ;;  %v1890_v27 = vrot.slane %v1889_v59, 4  ;;  %v1918_v30 = vrot.slane %v1917_v3, 4  ;;  %v1084_v49 = vpop.permute.xlu0 %1083 }
  0x93   :  { %v860_v48 = vld [vmem:[#allocation2 + $0x10] sm:$0xe]  ;;  %v937_v5 = vrot.slane %v863_v35, 5  ;;  %v862_v51 = vld [vmem:[#allocation2 + $0x18] sm:$0xe]  ;;  %vm847_vm14 = vcmask 1048064  }
  0x94   :  { %v569_v8 = vld [vmem:[#allocation2 + $0x84] sm:$0x1]  ;;  %v1903_v11 = vor.u32 %v1902_v63, %v1899_v62  ;;  %v2984_v52 = vrot.slane %v860_v48, 9  ;;  %v856_v53 = vld [vmem:[#allocation2] sm:$0xe]  ;;  %v2985_v56 = vrot.slane %v862_v51, 9 }
  0x95   :  { %v1693_v10 = vld [vmem:[#allocation2 + $0x84] sm:$0x1]  ;;  %v781_v14 = vshll.u32 %v569_v8, 16  ;;  %v859_v43 = vld [vmem:[#allocation2 + $0xc] sm:$0x1]  ;;  %v2982_v61 = vrot.slane %v856_v53, 9 }
  0x96   :  { %v1438_v6 = vld [vmem:[#allocation2 + $0x84] sm:$0x1]  ;;  %v1878_v17 = vshll.u32 %v1693_v10, 16  ;;  %v571_v2 = vld [vmem:[#allocation2 + $0x8c] sm:$0x1]  ;;  %v1904_v42 = vrot.slane %v1903_v11, 4  ;;  %v938_v63 = vsel %vm3594_vm12, %v2985_v56, %v937_v5 }
  0x97   :  { %v1529_v18 = vrot.slane %v1438_v6, 5  ;;  %v1695_v20 = vld [vmem:[#allocation2 + $0x8c] sm:$0x1]  ;;  %v783_v31 = vrot.slane %v781_v14, 5  ;;  %v795_v15 = vshll.u32 %v571_v2, 16  ;;  %v929_v3 = vrot.slane %v859_v43, 5 }
  0x98   :  { %v1880_v32 = vrot.slane %v1878_v17, 5  ;;  %v1892_v37 = vshll.u32 %v1695_v20, 16  ;;  %v1440_v21 = vld [vmem:[#allocation2 + $0x8c] sm:$0x1]  ;;  %v858_v58 = vld [vmem:[#allocation2 + $0x8] sm:$0xe] }
  0x99   :  { %v1530_v41 = vsel %vm3594_vm12, %v3035_v22, %v1529_v18  ;;  %v1533_v1 = vrot.slane %v1440_v21, 5  ;;  %v784_v44 = vsel %vm3565_vm9, %v779_v26, %v783_v31  ;;  %v797_v23 = vrot.slane %v795_v15, 5  ;;  %v1697_v38 = vld [vmem:[#allocation2 + $0x94] sm:$0x1]  ;;  %v857_v26 = vld [vmem:[#allocation2 + $0x4] sm:$0x1] }
  0x9a   :  { %v1881_v39 = vsel %vm3565_vm9, %v4065_v55, %v1880_v32  ;;  %v1894_v45 = vrot.slane %v1892_v37, 5  ;;  %v1442_v46 = vld [vmem:[#allocation2 + $0x94] sm:$0x1]  ;;  %v3044_v47 = vcombine.low %v1526_v28, %v1530_v41  ;;  %v1906_v9 = vshll.u32 %v1697_v38, 16  ;;  %v3352_v17 = vld [vmem:[#allocation2 + $0x10] ss:$8 sps:$4 sm:$0xff]  }
  0x9b   :  { %v1534_v29 = vsel %vm3594_vm12, %v3036_v13, %v1533_v1  ;;  %v1537_v4 = vrot.slane %v1442_v46, 5  ;;  %v861_v22 = vld [vmem:[#allocation2 + $0x14] sm:$0x1]  ;;  %v798_v50 = vsel %vm3565_vm9, %v793_v12, %v797_v23  ;;  %v925_v57 = vrot.slane %v857_v26, 5  ;;  %533 = vst.msk [vmem:[#allocation3 + $0x28] sm:$0xff] %vm531_vm13, %v3352_v17  ;;  %v4121_v41 = vld [vmem:[%s4427_s1 + $0x108] sm:$0xff]  }
  0x9c   :  { %v1895_v25 = vsel %vm3565_vm9, %v1890_v27, %v1894_v45  ;;  %v2981_v54 = vcombine.low %v784_v44, %v798_v50  ;;  %1575 = vrot.lane.b32.xlu1 %v3044_v47, %s3432_s24  ;;  %v1908_v40 = vrot.slane %v1906_v9, 5  ;;  %v933_v33 = vrot.slane %v861_v22, 5  ;;  %v824_v18 = vpop.permute.xlu0 %823  ;;  %v3358_v2 = vld [vmem:[#allocation2 + $0x10] ss:$8 sps:$4 sm:$0xff]   ;;  %v864_v27 = vld [vmem:[#allocation2 + $0x20] sm:$0xe] }
  0x9d   :  { %v1538_v16 = vsel %vm3594_vm12, %v3037_v19, %v1537_v4  ;;  %v3060_v59 = vcombine.low %v1881_v39, %v1895_v25  ;;  %v2983_v60 = vrot.slane %v858_v58, 9  ;;  %v1923_v12 = vsel %vm3565_vm9, %v1918_v30, %v4071_v0  ;;  %v826_v0 = vpop.permute.xlu1 %825  ;;  %v3353_v19 = vld [vmem:[#allocation2] ss:$8 sps:$4 sm:$0xff]   ;;  %1660 = vst.msk [vmem:[#allocation3 + $0x18] sm:$0xff] %vm531_vm13, %v3358_v2  ;;  %v865_v28 = vld [vmem:[#allocation2 + $0x24] sm:$0x1] }
  0x9e   :  { %v3045_v55 = vcombine.low %v1534_v29, %v1538_v16  ;;  %837 = vrot.lane.b32.xlu0 %v2981_v54, %s3432_s24  ;;  %v1909_v13 = vsel %vm3565_vm9, %v1904_v42, %v1908_v40  ;;  %v934_v62 = vsel %vm3594_vm12, %v2984_v52, %v933_v33  ;;  %v926_v10 = vsel %vm3594_vm12, %v2982_v61, %v925_v57  ;;  %v866_v30 = vld [vmem:[#allocation2 + $0x28] sm:$0xe]  ;;  %v867_v31 = vld [vmem:[#allocation2 + $0x2c] sm:$0x1]  ;;  %v1117_v23 = vld [vmem:[#allocation2 + $0x10] sm:$0xf] }
  0x9f   :  { %v2999_v8 = vcombine.low %v934_v62, %v938_v63  ;;  %v930_v6 = vsel %vm3594_vm12, %v2983_v60, %v929_v3  ;;  %v3061_v14 = vcombine.low %v1909_v13, %v1923_v12  ;;  %849 = vst.msk [vmem:[#allocation3 + $0x28] sm:$0xff] %vm847_vm14, %v826_v0  ;;  %v2986_v15 = vrot.slane %v864_v27, 9  ;;  %v1116_v44 = vld [vmem:[#allocation2 + $0xc] sm:$0x1]  ;;  %v1118_v39 = vld [vmem:[#allocation2 + $0x14] sm:$0x1] }
  0xa0   :  { %1577 = vrot.lane.b32.xlu1 %v3045_v55, %s3432_s24  ;;  %v2998_v11 = vcombine.low %v926_v10, %v930_v6  ;;  %532 = vst.msk [vmem:[#allocation3] sm:$0xff] %vm531_vm13, %v3353_v19  ;;  %v941_v32 = vrot.slane %v865_v28, 5  ;;  %v2987_v37 = vrot.slane %v866_v30, 9  ;;  %v945_v1 = vrot.slane %v867_v31, 5  ;;  %v1115_v9 = vld [vmem:[#allocation2 + $0x8] sm:$0xf]  ;;  %v1088_v48 = vpop.permute.xlu0 %1087 }
  0xa1   :  { %1020 = vst.msk [vmem:[#allocation3 + $0x30] sm:$0xff] %vm531_vm13, %v2999_v8  ;;  %v1157_v38 = vshll.u32 %v1116_v44, 16  ;;  %v1162_v46 = vshrl.u32 %v1117_v23, 16  ;;  %v1165_v47 = vshll.u32 %v1117_v23, 16  ;;  %v1171_v22 = vshll.u32 %v1118_v39, 16  ;;  %v4131_v54 = vld [vmem:[%s4427_s1 + $0x110] sm:$0xff]  }
  0xa2   :  { %1960 = vrot.lane.b32.xlu0 %v3060_v59, %s3432_s24  ;;  %1108 = vst.msk [vmem:[#allocation3 + $0x30] sm:$0xff] %vm847_vm14, %v1086_v7  ;;  %848 = vst.msk [vmem:[#allocation3] sm:$0xff] %vm847_vm14, %v824_v18  ;;  %v1949_v20 = vpop.permute.xlu1 %1948  ;;  %v942_v35 = vsel %vm3594_vm12, %v2986_v15, %v941_v32  ;;  %v946_v45 = vsel %vm3594_vm12, %v2987_v37, %v945_v1  ;;  %v1148_v50 = vshrl.u32 %v1115_v9, 16  ;;  %v1151_v25 = vshll.u32 %v1115_v9, 16  ;;  %v3365_v33 = vld [vmem:[#allocation2 + $0x20] ss:$8 sps:$4 sm:$0xff]  }
  0xa3   :  { %1019 = vst.msk [vmem:[#allocation3 + $0x8] sm:$0xff] %vm531_vm13, %v2998_v11  ;;  %v3000_v4 = vcombine.low %v942_v35, %v946_v45  ;;  %v1159_v5 = vrot.slane %v1157_v38, 5  ;;  %v1164_v51 = vrot.slane %v1162_v46, 4  ;;  %v1167_v52 = vrot.slane %v1165_v47, 5  ;;  %v3366_v61 = vld [vmem:[#allocation2 + $0x20] ss:$8 sps:$4 sm:$0xff]  }
  0xa4   :  { %1107 = vst.msk [vmem:[#allocation3 + $0x8] sm:$0xff] %vm847_vm14, %v1084_v49  ;;  %1972 = vst.msk [vmem:[#allocation3 + $0x18] sm:$0xff] %vm847_vm14, %v1949_v20  ;;  %v1173_v40 = vrot.slane %v1171_v22, 5  ;;  %v1150_v16 = vrot.slane %v1148_v50, 4  ;;  %v1153_v7 = vrot.slane %v1151_v25, 5  ;;  %v4142_v57 = vld [vmem:[%s4427_s1 + $0x118] sm:$0xff]  }
  0xa5   :  { %1021 = vst.msk [vmem:[#allocation3 + $0x58] sm:$0xff] %vm531_vm13, %v3000_v4  ;;  %v1168_v43 = vor.u32 %v1167_v52, %v1164_v51  ;;  %534 = vst.msk [vmem:[#allocation3 + $0x50] sm:$0xff] %vm531_vm13, %v3365_v33  ;;  %v868_v13 = vld [vmem:[#allocation2 + $0x30] sm:$0xe]  ;;  %v869_v12 = vld [vmem:[#allocation2 + $0x34] sm:$0x1] }
  0xa6   :  { %1962 = vrot.lane.b32.xlu0 %v3061_v14, %s3432_s24  ;;  %v1564_v53 = vpop.permute.xlu1 %1563  ;;  %1109 = vst.msk [vmem:[#allocation3 + $0x58] sm:$0xff] %vm847_vm14, %v1088_v48  ;;  %v1154_v55 = vor.u32 %v1153_v7, %v1150_v16  ;;  %v2153_v49 = vld [vmem:[#allocation3 + $0x28] sm:$0xff]  ;;  %v870_v63 = vld [vmem:[#allocation2 + $0x38] sm:$0xe]  ;;  %v871_v8 = vld [vmem:[#allocation2 + $0x3c] sm:$0x1] }
  0xa7   :  { %v1169_v56 = vrot.slane %v1168_v43, 4  ;;  %1661 = vst.msk [vmem:[#allocation3 + $0x40] sm:$0xff] %vm531_vm13, %v3366_v61  ;;  %v2988_v10 = vrot.slane %v868_v13, 9  ;;  %v949_v6 = vrot.slane %v869_v12, 5  ;;  %v2989_v14 = vrot.slane %v870_v63, 9 }
  0xa8   :  { %v1155_v58 = vrot.slane %v1154_v55, 4  ;;  %v953_v0 = vrot.slane %v871_v8, 5  ;;  %v1119_v17 = vld [vmem:[#allocation2 + $0x18] sm:$0xf]  ;;  %v1120_v18 = vld [vmem:[#allocation2 + $0x1c] sm:$0x1] }
  0xa9   :  { %v2154_v21 = vld [vmem:[#allocation3 + $0x30] sm:$0xff]  ;;  %v2148_v29 = vld [vmem:[#allocation3] sm:$0xff]  ;;  %v1174_v3 = vsel %vm3565_vm9, %v1169_v56, %v1173_v40  ;;  %v950_v19 = vsel %vm3594_vm12, %v2988_v10, %v949_v6  ;;  %v1176_v27 = vshrl.u32 %v1119_v17, 16  ;;  %v1179_v28 = vshll.u32 %v1119_v17, 16  ;;  %v874_v25 = vld [vmem:[#allocation2 + $0x58] sm:$0xe] }
  0xaa   :  { %v1160_v62 = vsel %vm3565_vm9, %v1155_v58, %v1159_v5  ;;  %v1121_v2 = vld [vmem:[#allocation2 + $0x20] sm:$0xf]  ;;  %v1122_v20 = vld [vmem:[#allocation2 + $0x24] sm:$0x1]  ;;  %v954_v30 = vsel %vm3594_vm12, %v2989_v14, %v953_v0  ;;  %v1185_v31 = vshll.u32 %v1120_v18, 16  ;;  %v2991_v40 = vrot.slane %v874_v25, 9 }
  0xab   :  { %v2149_v42 = vld [vmem:[#allocation3 + $0x8] sm:$0xff]  ;;  %v2151_v26 = vld [vmem:[#allocation3 + $0x18] sm:$0xff]  ;;  %v3014_v11 = vcombine.low %v1160_v62, %v1174_v3  ;;  %v1190_v15 = vshrl.u32 %v1121_v2, 16  ;;  %v1193_v32 = vshll.u32 %v1121_v2, 16  ;;  %v1181_v1 = vrot.slane %v1179_v28, 5 }
  0xac   :  { %2532 = vmatprep.mubr.bf16.mxu0 %v2149_v42  ;;  %2629 = vmatprep.mubr.bf16.mxu1 %v2151_v26  ;;  %v828_v59 = vpop.permute.xlu0 %827  ;;  %v1178_v42 = vrot.slane %v1176_v27, 4  ;;  %v1199_v35 = vshll.u32 %v1122_v20, 16  ;;  %v1187_v44 = vrot.slane %v1185_v31, 5  ;;  %v3369_v45 = vld [vmem:[#allocation2 + $0x30] ss:$8 sps:$4 sm:$0xff]  }
  0xad   :  { %2533 = vmatmul.mubr.bf16.vlgmr.msra.gmra.mrb[0].mxu0 %v2148_v29  ;;  %850 = vst.msk [vmem:[#allocation3 + $0x50] sm:$0xff] %vm847_vm14, %v828_v59  ;;  %v2159_v37 = vld [vmem:[#allocation3 + $0x58] sm:$0xff]  ;;  %v1192_v23 = vrot.slane %v1190_v15, 4  ;;  %v1195_v39 = vrot.slane %v1193_v32, 5  ;;  %v872_v48 = vld [vmem:[#allocation2 + $0x50] sm:$0xe] }
  0xae   :  { %3287 = vmatpush3.bf16.msra.mxu0 %v3995_v24  ;;  %2540 = vmatprep.mubr.bf16.mxu0 %v2154_v21  ;;  %1403 = vst.msk [vmem:[#allocation3 + $0x10] sm:$0xff] %vm531_vm13, %v3014_v11  ;;  %v3001_v21 = vcombine.low %v950_v19, %v954_v30  ;;  %v1182_v46 = vor.u32 %v1181_v1, %v1178_v42  ;;  %v1201_v47 = vrot.slane %v1199_v35, 5  ;;  %535 = vst.msk [vmem:[#allocation3 + $0x78] sm:$0xff] %vm531_vm13, %v3369_v45  ;;  %v3370_v4 = vld [vmem:[#allocation2 + $0x30] ss:$8 sps:$4 sm:$0xff]  }
  0xaf   :  { %3288 = vmatprep.subr.bf16.mxu0 %v4121_v41  ;;  %v1951_v60 = vpop.permute.xlu1 %1950  ;;  %1587 = vst.msk [vmem:[#allocation3 + $0x10] sm:$0xff] %vm847_vm14, %v1564_v53  ;;  %v1196_v29 = vor.u32 %v1195_v39, %v1192_v23  ;;  %v873_v22 = vld [vmem:[#allocation2 + $0x54] sm:$0x1]  ;;  %v875_v5 = vld [vmem:[#allocation2 + $0x5c] sm:$0x1]  ;;  %v2990_v51 = vrot.slane %v872_v48, 9 }
  0xb0   :  { %1973 = vst.msk [vmem:[#allocation3 + $0x40] sm:$0xff] %vm847_vm14, %v1951_v60  ;;  %v1183_v50 = vrot.slane %v1182_v46, 4  ;;  %v957_v53 = vrot.slane %v873_v22, 5  ;;  %v961_v16 = vrot.slane %v875_v5, 5  ;;  %v1123_v7 = vld [vmem:[#allocation2 + $0x28] sm:$0xf] }
  0xb1   :  { %1022 = vst.msk [vmem:[#allocation3 + $0x80] sm:$0xff] %vm531_vm13, %v3001_v21  ;;  %v1197_v52 = vrot.slane %v1196_v29, 4  ;;  %1662 = vst.msk [vmem:[#allocation3 + $0x68] sm:$0xff] %vm531_vm13, %v3370_v4  ;;  %v1124_v43 = vld [vmem:[#allocation2 + $0x2c] sm:$0x1]  ;;  %v1204_v59 = vshrl.u32 %v1123_v7, 16 }
  0xb2   :  { %3289 = vmatpush3.bf16.msra.mxu0 %v4121_v41  ;;  %v1188_v26 = vsel %vm3565_vm9, %v1183_v50, %v1187_v44  ;;  %v1125_v55 = vld [vmem:[#allocation2 + $0x30] sm:$0xf]  ;;  %v1126_v33 = vld [vmem:[#allocation2 + $0x34] sm:$0x1]  ;;  %v962_v58 = vsel %vm3594_vm12, %v2991_v40, %v961_v16  ;;  %v1207_v62 = vshll.u32 %v1123_v7, 16  ;;  %v1213_v63 = vshll.u32 %v1124_v43, 16 }
  0xb3   :  { %3290 = vmatprep.subr.bf16.mxu0 %v4131_v54  ;;  %v1202_v56 = vsel %vm3565_vm9, %v1197_v52, %v1201_v47  ;;  %v1566_v13 = vpop.permute.xlu1 %1565  ;;  %v1206_v8 = vrot.slane %v1204_v59, 4  ;;  %v1218_v10 = vshrl.u32 %v1125_v55, 16  ;;  %v1221_v6 = vshll.u32 %v1125_v55, 16  ;;  %v3372_v17 = vld [vmem:[#allocation2 + $0x50] ss:$8 sps:$4 sm:$0xff]  }
  0xb4   :  { %v2158_v9 = vld [vmem:[#allocation3 + $0x50] sm:$0xff]  ;;  %v3015_v60 = vcombine.low %v1188_v26, %v1202_v56  ;;  %v1227_v11 = vshll.u32 %v1126_v33, 16  ;;  %v1209_v14 = vrot.slane %v1207_v62, 5  ;;  %v1215_v0 = vrot.slane %v1213_v63, 5  ;;  %536 = vst.msk [vmem:[#allocation3 + $0xa0] sm:$0xff] %vm531_vm13, %v3372_v17 }
  0xb5   :  { %2541 = vmatmul.mubr.bf16.gmra.mrb[4].mxu0 %v2153_v49  ;;  %v958_v49 = vsel %vm3594_vm12, %v2990_v51, %v957_v53  ;;  %v1220_v18 = vrot.slane %v1218_v10, 4  ;;  %v1223_v19 = vrot.slane %v1221_v6, 5  ;;  %v3373_v28 = vld [vmem:[#allocation2 + $0x40] ss:$8 sps:$4 sm:$0xff]   ;;  %v877_v30 = vld [vmem:[#allocation2 + $0x64] sm:$0x1] }
  0xb6   :  { %3291 = vmatpush3.bf16.msra.mxu0 %v4131_v54  ;;  %2548 = vmatprep.mubr.bf16.mxu0 %v2159_v37  ;;  %v2150_v61 = vld [vmem:[#allocation3 + $0x10] sm:$0xff]  ;;  %v3002_v12 = vcombine.low %v958_v49, %v962_v58  ;;  %1404 = vst.msk [vmem:[#allocation3 + $0x38] sm:$0xff] %vm531_vm13, %v3015_v60  ;;  %v1229_v2 = vrot.slane %v1227_v11, 5  ;;  %v1210_v27 = vor.u32 %v1209_v14, %v1206_v8  ;;  %v878_v15 = vld [vmem:[#allocation2 + $0x68] sm:$0xe]  ;;  %v965_v21 = vrot.slane %v877_v30, 5 }
  0xb7   :  { %3292 = vmatprep.subr.bf16.mxu0 %v4142_v57  ;;  %v1090_v38 = vpop.permute.xlu0 %1089  ;;  %v2156_v3 = vld [vmem:[#allocation3 + $0x40] sm:$0xff]  ;;  %2630 = vmatmul.mubr.bf16.vlgmr.msra.gmra.mrb[0].mxu1 %v2150_v61  ;;  %1588 = vst.msk [vmem:[#allocation3 + $0x38] sm:$0xff] %vm847_vm14, %v1566_v13  ;;  %v1224_v31 = vor.u32 %v1223_v19, %v1220_v18  ;;  %v879_v32 = vld [vmem:[#allocation2 + $0x6c] sm:$0x1]  ;;  %v2993_v1 = vrot.slane %v878_v15, 9 }
  0xb8   :  { %1110 = vst.msk [vmem:[#allocation3 + $0x80] sm:$0xff] %vm847_vm14, %v1090_v38  ;;  %2637 = vmatprep.mubr.bf16.mxu1 %v2156_v3  ;;  %3314 = vmatpush3.bf16.msra.mxu1 %v3995_v24  ;;  %v876_v24 = vld [vmem:[#allocation2 + $0x60] sm:$0xe]  ;;  %v1211_v42 = vrot.slane %v1210_v27, 4  ;;  %v969_v35 = vrot.slane %v879_v32, 5 }
  0xb9   :  { %1023 = vst.msk [vmem:[#allocation3 + $0xa8] sm:$0xff] %vm531_vm13, %v3002_v12  ;;  %3311 = vmatprep.subr.bf16.mxu1 %v4121_v41  ;;  %v2992_v37 = vrot.slane %v876_v24, 9  ;;  %1663 = vst.msk [vmem:[#allocation3 + $0x90] sm:$0xff] %vm531_vm13, %v3373_v28  ;;  %v1127_v44 = vld [vmem:[#allocation2 + $0x38] sm:$0xf]  ;;  %v1225_v23 = vrot.slane %v1224_v31, 4 }
  0xba   :  { %3293 = vmatpush3.bf16.msra.mxu0 %v4142_v57  ;;  %v1128_v45 = vld [vmem:[#allocation2 + $0x3c] sm:$0x1]  ;;  %v1129_v38 = vld [vmem:[#allocation2 + $0x40] sm:$0xf]  ;;  %v1232_v46 = vshrl.u32 %v1127_v44, 16  ;;  %v1216_v47 = vsel %vm3565_vm9, %v1211_v42, %v1215_v0  ;;  %v1235_v29 = vshll.u32 %v1127_v44, 16 }
  0xbb   :  { %v966_v39 = vsel %vm3594_vm12, %v2992_v37, %v965_v21  ;;  %v1241_v4 = vshll.u32 %v1128_v45, 16  ;;  %v1230_v50 = vsel %vm3565_vm9, %v1225_v23, %v1229_v2  ;;  %v1246_v51 = vshrl.u32 %v1129_v38, 16  ;;  %v3374_v52 = vld [vmem:[#allocation2 + $0x60] ss:$8 sps:$4 sm:$0xff]   ;;  %v880_v61 = vld [vmem:[#allocation2 + $0x70] sm:$0xe] }
  0xbc   :  { %3315 = vmatpush3.bf16.msra.mxu1 %v4121_v41  ;;  %v970_v41 = vsel %vm3594_vm12, %v2993_v1, %v969_v35  ;;  %v1234_v5 = vrot.slane %v1232_v46, 4  ;;  %v3016_v53 = vcombine.low %v1216_v47, %v1230_v50  ;;  %v1237_v16 = vrot.slane %v1235_v29, 5  ;;  %537 = vst.msk [vmem:[#allocation3 + $0xc8] sm:$0xff] %vm531_vm13, %v3374_v52  ;;  %v3375_v55 = vld [vmem:[#allocation2 + $0x60] ss:$8 sps:$4 sm:$0xff]  }
  0xbd   :  { %2549 = vmatmul.mubr.bf16.gmra.mrb[8].mxu0 %v2158_v9  ;;  %3312 = vmatprep.subr.bf16.mxu1 %v4131_v54  ;;  %v1130_v9 = vld [vmem:[#allocation2 + $0x44] sm:$0x1]  ;;  %v3003_v25 = vcombine.low %v966_v39, %v970_v41  ;;  %v1249_v7 = vshll.u32 %v1129_v38, 16  ;;  %v1248_v26 = vrot.slane %v1246_v51, 4  ;;  %v1243_v33 = vrot.slane %v1241_v4, 5  ;;  %1664 = vst.msk [vmem:[#allocation3 + $0xb8] sm:$0xff] %vm531_vm13, %v3375_v55 }
  0xbe   :  { %v2155_v40 = vld [vmem:[#allocation3 + $0x38] sm:$0xff]  ;;  %v1255_v43 = vshll.u32 %v1130_v9, 16  ;;  %1405 = vst.msk [vmem:[#allocation3 + $0x60] sm:$0xff] %vm531_vm13, %v3016_v53  ;;  %v881_v49 = vld [vmem:[#allocation2 + $0x74] sm:$0x1]  ;;  %v2994_v12 = vrot.slane %v880_v61, 9 }
  0xbf   :  { %v2164_v20 = vld [vmem:[#allocation3 + $0x80] sm:$0xff]  ;;  %2638 = vmatmul.mubr.bf16.gmra.mrb[4].mxu1 %v2155_v40  ;;  %1024 = vst.msk [vmem:[#allocation3 + $0xd0] sm:$0xff] %vm531_vm13, %v3003_v25  ;;  %v1251_v56 = vrot.slane %v1249_v7, 5  ;;  %v882_v60 = vld [vmem:[#allocation2 + $0x78] sm:$0xe]  ;;  %v973_v8 = vrot.slane %v881_v49, 5 }
  0xc0   :  { %2556 = vmatprep.mubr.bf16.mxu0 %v2164_v20  ;;  %3316 = vmatpush3.bf16.msra.mxu1 %v4131_v54  ;;  %v1238_v54 = vor.u32 %v1237_v16, %v1234_v5  ;;  %v1257_v3 = vrot.slane %v1255_v43, 5  ;;  %v883_v13 = vld [vmem:[#allocation2 + $0x7c] sm:$0x1]  ;;  %v2995_v10 = vrot.slane %v882_v60, 9  ;;  %v1131_v6 = vld [vmem:[#allocation2 + $0x58] sm:$0xf] }
  0xc1   :  { %3313 = vmatprep.subr.bf16.mxu1 %v4142_v57  ;;  %v1252_v63 = vor.u32 %v1251_v56, %v1248_v26  ;;  %v977_v11 = vrot.slane %v883_v13, 5  ;;  %v1132_v14 = vld [vmem:[#allocation2 + $0x5c] sm:$0x1]  ;;  %v1133_v0 = vld [vmem:[#allocation2 + $0x60] sm:$0xf]  ;;  %v1260_v17 = vshrl.u32 %v1131_v6, 16 }
  0xc2   :  { %v1239_v62 = vrot.slane %v1238_v54, 4  ;;  %v1134_v2 = vld [vmem:[#allocation2 + $0x64] sm:$0x1]  ;;  %v1263_v20 = vshll.u32 %v1131_v6, 16  ;;  %v1269_v15 = vshll.u32 %v1132_v14, 16  ;;  %v1274_v32 = vshrl.u32 %v1133_v0, 16 }
  0xc3   :  { %v1253_v19 = vrot.slane %v1252_v63, 4  ;;  %v978_v30 = vsel %vm3594_vm12, %v2995_v10, %v977_v11  ;;  %v1262_v31 = vrot.slane %v1260_v17, 4  ;;  %v1277_v1 = vshll.u32 %v1133_v0, 16  ;;  %v3377_v46 = vld [vmem:[#allocation2 + $0x70] ss:$8 sps:$4 sm:$0xff]  }
  0xc4   :  { %3317 = vmatpush3.bf16.msra.mxu1 %v4142_v57  ;;  %v1244_v18 = vsel %vm3565_vm9, %v1239_v62, %v1243_v33  ;;  %v974_v57 = vsel %vm3594_vm12, %v2994_v12, %v973_v8  ;;  %v1265_v42 = vrot.slane %v1263_v20, 5  ;;  %v1276_v44 = vrot.slane %v1274_v32, 4  ;;  %538 = vst.msk [vmem:[#allocation3 + $0xf0] sm:$0xff] %vm531_vm13, %v3377_v46  ;;  %v884_v50 = vld [vmem:[#allocation2 + $0x80] sm:$0xe] }
  0xc5   :  { %v1258_v37 = vsel %vm3565_vm9, %v1253_v19, %v1257_v3  ;;  %v3004_v21 = vcombine.low %v974_v57, %v978_v30  ;;  %v1283_v23 = vshll.u32 %v1134_v2, 16  ;;  %v1271_v45 = vrot.slane %v1269_v15, 5  ;;  %v885_v25 = vld [vmem:[#allocation2 + $0x84] sm:$0x1]  ;;  %v886_v5 = vld [vmem:[#allocation2 + $0x88] sm:$0xe] }
  0xc6   :  { %v3017_v35 = vcombine.low %v1244_v18, %v1258_v37  ;;  %v1266_v39 = vor.u32 %v1265_v42, %v1262_v31  ;;  %v1279_v38 = vrot.slane %v1277_v1, 5  ;;  %v887_v51 = vld [vmem:[#allocation2 + $0x8c] sm:$0x1]  ;;  %v2996_v40 = vrot.slane %v884_v50, 9  ;;  %v1135_v7 = vld [vmem:[#allocation2 + $0x68] sm:$0xf] }
  0xc7   :  { %1025 = vst.msk [vmem:[#allocation3 + $0xf8] sm:$0xff] %vm531_vm13, %v3004_v21  ;;  %v981_v16 = vrot.slane %v885_v25, 5  ;;  %v2997_v43 = vrot.slane %v886_v5, 9  ;;  %v985_v55 = vrot.slane %v887_v51, 5  ;;  %v1136_v54 = vld [vmem:[#allocation2 + $0x6c] sm:$0x1] }
  0xc8   :  { %v830_v48 = vpop.permute.xlu0 %829  ;;  %1406 = vst.msk [vmem:[#allocation3 + $0x88] sm:$0xff] %vm531_vm13, %v3017_v35  ;;  %v1267_v29 = vrot.slane %v1266_v39, 4  ;;  %v1280_v4 = vor.u32 %v1279_v38, %v1276_v44  ;;  %v1288_v33 = vshrl.u32 %v1135_v7, 16  ;;  %v1291_v3 = vshll.u32 %v1135_v7, 16  ;;  %v3379_v0 = vld [vmem:[#allocation2 + $0x80] ss:$8 sps:$4 sm:$0xff]  }
  0xc9   :  { %v1953_v22 = vpop.permute.xlu1 %1952  ;;  %851 = vst.msk [vmem:[#allocation3 + $0x78] sm:$0xff] %vm847_vm14, %v830_v48  ;;  %v1285_v48 = vrot.slane %v1283_v23, 5  ;;  %v982_v49 = vsel %vm3594_vm12, %v2996_v40, %v981_v16  ;;  %v1297_v60 = vshll.u32 %v1136_v54, 16  ;;  %v986_v12 = vsel %vm3594_vm12, %v2997_v43, %v985_v55  ;;  %v3380_v20 = vld [vmem:[#allocation2 + $0x80] ss:$8 sps:$4 sm:$0xff]  }
  0xca   :  { %1974 = vst.msk [vmem:[#allocation3 + $0x68] sm:$0xff] %vm847_vm14, %v1953_v22  ;;  %v3378_v22 = vld [vmem:[#allocation2 + $0x70] ss:$8 sps:$4 sm:$0xff]   ;;  %v1272_v52 = vsel %vm3565_vm9, %v1267_v29, %v1271_v45  ;;  %v1281_v53 = vrot.slane %v1280_v4, 4  ;;  %v1290_v62 = vrot.slane %v1288_v33, 4  ;;  %v3005_v10 = vcombine.low %v982_v49, %v986_v12 }
  0xcb   :  { %1665 = vst.msk [vmem:[#allocation3 + $0xe0] sm:$0xff] %vm531_vm13, %v3378_v22  ;;  %v1293_v6 = vrot.slane %v1291_v3, 5  ;;  %v1299_v11 = vrot.slane %v1297_v60, 5  ;;  %539 = vst.msk [vmem:[#allocation3 + $0x118] sm:$0xff] %vm531_vm13, %v3379_v0  ;;  %v1141_v30 = vld [vmem:[#allocation2 + $0x80] sm:$0xf] }
  0xcc   :  { %v1092_v58 = vpop.permute.xlu0 %1091  ;;  %v1286_v61 = vsel %vm3565_vm9, %v1281_v53, %v1285_v48  ;;  %1026 = vst.msk [vmem:[#allocation3 + $0x120] sm:$0xff] %vm531_vm13, %v3005_v10  ;;  %1666 = vst.msk [vmem:[#allocation3 + $0x108] sm:$0xff] %vm531_vm13, %v3380_v20  ;;  %v1142_v37 = vld [vmem:[#allocation2 + $0x84] sm:$0x1]  ;;  %v1330_v35 = vshrl.u32 %v1141_v30, 16  ;;  %v1333_v44 = vshll.u32 %v1141_v30, 16 }
  0xcd   :  { %v1568_v59 = vpop.permute.xlu1 %1567  ;;  %1111 = vst.msk [vmem:[#allocation3 + $0xa8] sm:$0xff] %vm847_vm14, %v1092_v58  ;;  %v1137_v58 = vld [vmem:[#allocation2 + $0x70] sm:$0xf]  ;;  %v3018_v13 = vcombine.low %v1272_v52, %v1286_v61  ;;  %v1294_v57 = vor.u32 %v1293_v6, %v1290_v62  ;;  %v1339_v23 = vshll.u32 %v1142_v37, 16  ;;  %v1143_v51 = vld [vmem:[#allocation2 + $0x88] sm:$0xf] }
  0xce   :  { %1589 = vst.msk [vmem:[#allocation3 + $0x60] sm:$0xff] %vm847_vm14, %v1568_v59  ;;  %v1138_v59 = vld [vmem:[#allocation2 + $0x74] sm:$0x1]  ;;  %v1302_v63 = vshrl.u32 %v1137_v58, 16  ;;  %v1305_v14 = vshll.u32 %v1137_v58, 16  ;;  %v1344_v7 = vshrl.u32 %v1143_v51, 16 }
  0xcf   :  { %1407 = vst.msk [vmem:[#allocation3 + $0xb0] sm:$0xff] %vm531_vm13, %v3018_v13  ;;  %v1311_v18 = vshll.u32 %v1138_v59, 16  ;;  %v1295_v15 = vrot.slane %v1294_v57, 4  ;;  %v1341_v22 = vrot.slane %v1339_v23, 5  ;;  %v3382_v50 = vld [vmem:[#allocation2 + $0x90] ss:$8 sps:$4 sm:$0xff]  }
  0xd0   :  { %v2163_v24 = vld [vmem:[#allocation3 + $0x78] sm:$0xff]  ;;  %v1304_v17 = vrot.slane %v1302_v63, 4  ;;  %v1307_v2 = vrot.slane %v1305_v14, 5  ;;  %v1144_v52 = vld [vmem:[#allocation2 + $0x8c] sm:$0x1]  ;;  %1667 = vst.msk [vmem:[#allocation3 + $0x130] sm:$0xff] %vm531_vm13, %v3382_v50 }
  0xd1   :  { %v832_v27 = vpop.permute.xlu0 %831  ;;  %v2161_v28 = vld [vmem:[#allocation3 + $0x68] sm:$0xff]  ;;  %2557 = vmatmul.mubr.bf16.gmra.mrb[12].mxu0 %v2163_v24  ;;  %v1140_v24 = vld [vmem:[#allocation2 + $0x7c] sm:$0x1]  ;;  %v1300_v45 = vsel %vm3565_vm9, %v1295_v15, %v1299_v11  ;;  %v1145_v53 = vld [vmem:[#allocation2 + $0x90] sm:$0xf]  ;;  %v1353_v43 = vshll.u32 %v1144_v52, 16 }
  0xd2   :  { %852 = vst.msk [vmem:[#allocation3 + $0xa0] sm:$0xff] %vm847_vm14, %v832_v27  ;;  %2645 = vmatprep.mubr.bf16.mxu1 %v2161_v28  ;;  %v1139_v27 = vld [vmem:[#allocation2 + $0x78] sm:$0xf]  ;;  %v1313_v28 = vrot.slane %v1311_v18, 5  ;;  %v1308_v32 = vor.u32 %v1307_v2, %v1304_v17  ;;  %v1325_v42 = vshll.u32 %v1140_v24, 16  ;;  %v1358_v33 = vshrl.u32 %v1145_v53, 16 }
  0xd3   :  { %v1316_v31 = vshrl.u32 %v1139_v27, 16  ;;  %v1319_v21 = vshll.u32 %v1139_v27, 16  ;;  %v1146_v16 = vld [vmem:[#allocation2 + $0x94] sm:$0x1]  ;;  %v1980_v49 = vld [vmem:[#allocation2 + $0x10] sm:$0xe] }
  0xd4   :  { %v2169_v41 = vld [vmem:[#allocation3 + $0xa8] sm:$0xff]  ;;  %v1309_v38 = vrot.slane %v1308_v32, 4  ;;  %v1367_v61 = vshll.u32 %v1146_v16, 16  ;;  %v1346_v59 = vrot.slane %v1344_v7, 4  ;;  %v1355_v60 = vrot.slane %v1353_v43, 5 }
  0xd5   :  { %v2160_v47 = vld [vmem:[#allocation3 + $0x60] sm:$0xff]  ;;  %2564 = vmatprep.mubr.bf16.mxu0 %v2169_v41  ;;  %v1318_v1 = vrot.slane %v1316_v31, 4  ;;  %v1321_v46 = vrot.slane %v1319_v21, 5  ;;  %v1332_v41 = vrot.slane %v1330_v35, 4  ;;  %v1981_v13 = vld [vmem:[#allocation2 + $0x14] sm:$0x1] }
  0xd6   :  { %2646 = vmatmul.mubr.bf16.gmra.mrb[8].mxu1 %v2160_v47  ;;  %v1327_v47 = vrot.slane %v1325_v42, 5  ;;  %v1314_v4 = vsel %vm3565_vm9, %v1309_v38, %v1313_v28  ;;  %v1360_v63 = vrot.slane %v1358_v33, 4  ;;  %v1369_v10 = vrot.slane %v1367_v61, 5  ;;  %v1982_v6 = vld [vmem:[#allocation2 + $0x18] sm:$0xe] }
  0xd7   :  { %v1955_v9 = vpop.permute.xlu1 %1954  ;;  %v1322_v48 = vor.u32 %v1321_v46, %v1318_v1  ;;  %v3019_v25 = vcombine.low %v1300_v45, %v1314_v4  ;;  %v1983_v0 = vld [vmem:[#allocation2 + $0x1c] sm:$0x1]  ;;  %v3062_v17 = vrot.slane %v1980_v49, 9  ;;  %v2046_v18 = vrot.slane %v1981_v13, 5  ;;  %v1985_v28 = vld [vmem:[#allocation2 + $0x24] sm:$0x1] }
  0xd8   :  { %1975 = vst.msk [vmem:[#allocation3 + $0x90] sm:$0xff] %vm847_vm14, %v1955_v9  ;;  %v1335_v9 = vrot.slane %v1333_v44, 5  ;;  %v3063_v20 = vrot.slane %v1982_v6, 9  ;;  %v2050_v27 = vrot.slane %v1983_v0, 5  ;;  %v1986_v24 = vld [vmem:[#allocation2 + $0x28] sm:$0xe] }
  0xd9   :  { %v2168_v26 = vld [vmem:[#allocation3 + $0xa0] sm:$0xff]  ;;  %v1323_v40 = vrot.slane %v1322_v48, 4  ;;  %1408 = vst.msk [vmem:[#allocation3 + $0xd8] sm:$0xff] %vm531_vm13, %v3019_v25  ;;  %v2047_v31 = vsel %vm3594_vm12, %v3062_v17, %v2046_v18  ;;  %v1987_v15 = vld [vmem:[#allocation2 + $0x2c] sm:$0x1]  ;;  %v2054_v37 = vrot.slane %v1985_v28, 5 }
  0xda   :  { %2565 = vmatmul.mubr.bf16.gmra.mrb[16].mxu0 %v2168_v26  ;;  %v1336_v5 = vor.u32 %v1335_v9, %v1332_v41  ;;  %v1347_v26 = vshll.u32 %v1143_v51, 16  ;;  %v2051_v1 = vsel %vm3594_vm12, %v3063_v20, %v2050_v27  ;;  %v3065_v35 = vrot.slane %v1986_v24, 9  ;;  %v1988_v23 = vld [vmem:[#allocation2 + $0x30] sm:$0xe]  ;;  %v1989_v46 = vld [vmem:[#allocation2 + $0x34] sm:$0x1] }
  0xdb   :  { %v1570_v56 = vpop.permute.xlu1 %1569  ;;  %v1328_v58 = vsel %vm3565_vm9, %v1323_v40, %v1327_v47  ;;  %v2058_v44 = vrot.slane %v1987_v15, 5  ;;  %v3078_v45 = vcombine.low %v2047_v31, %v2051_v1  ;;  %v1990_v47 = vld [vmem:[#allocation2 + $0x38] sm:$0xe]  ;;  %v1991_v41 = vld [vmem:[#allocation2 + $0x3c] sm:$0x1]  ;;  %v3066_v48 = vrot.slane %v1988_v23, 9 }
  0xdc   :  { %1590 = vst.msk [vmem:[#allocation3 + $0x88] sm:$0xff] %vm847_vm14, %v1570_v56  ;;  %v1094_v8 = vpop.permute.xlu0 %1093  ;;  %v1337_v54 = vrot.slane %v1336_v5, 4  ;;  %v1361_v56 = vshll.u32 %v1145_v53, 16  ;;  %v1349_v3 = vrot.slane %v1347_v26, 5  ;;  %v1996_v50 = vld [vmem:[#allocation2 + $0x60] sm:$0xe] }
  0xdd   :  { %1112 = vst.msk [vmem:[#allocation3 + $0xd0] sm:$0xff] %vm847_vm14, %v1094_v8  ;;  %v2059_v4 = vsel %vm3594_vm12, %v3065_v35, %v2058_v44  ;;  %v3067_v51 = vrot.slane %v1990_v47, 9  ;;  %v2066_v52 = vrot.slane %v1991_v41, 5  ;;  %v1997_v53 = vld [vmem:[#allocation2 + $0x64] sm:$0x1]  ;;  %v3070_v26 = vrot.slane %v1996_v50, 9 }
  0xde   :  { %v1342_v62 = vsel %vm3565_vm9, %v1337_v54, %v1341_v22  ;;  %v1363_v8 = vrot.slane %v1361_v56, 5  ;;  %v1350_v14 = vor.u32 %v1349_v3, %v1346_v59  ;;  %v2062_v22 = vrot.slane %v1989_v46, 5  ;;  %2140 = vst.msk [vmem:[#allocation3 + $0x20] sm:$0xff] %vm531_vm13, %v3078_v45  ;;  %v1998_v40 = vld [vmem:[#allocation2 + $0x68] sm:$0xe] }
  0xdf   :  { %v2166_v19 = vld [vmem:[#allocation3 + $0x90] sm:$0xff]  ;;  %v3020_v11 = vcombine.low %v1328_v58, %v1342_v62  ;;  %v1999_v7 = vld [vmem:[#allocation2 + $0x6c] sm:$0x1]  ;;  %v2078_v43 = vrot.slane %v1997_v53, 5  ;;  %v2067_v54 = vsel %vm3594_vm12, %v3067_v51, %v2066_v52  ;;  %v1992_v56 = vld [vmem:[#allocation2 + $0x40] sm:$0xe] }
  0xe0   :  { %2653 = vmatprep.mubr.bf16.mxu1 %v2166_v19  ;;  %v1984_v19 = vld [vmem:[#allocation2 + $0x20] sm:$0xe]  ;;  %v1364_v2 = vor.u32 %v1363_v8, %v1360_v63  ;;  %v1351_v30 = vrot.slane %v1350_v14, 4  ;;  %v2063_v36 = vsel %vm3594_vm12, %v3066_v48, %v2062_v22  ;;  %v2082_v33 = vrot.slane %v1999_v7, 5  ;;  %v1993_v61 = vld [vmem:[#allocation2 + $0x44] sm:$0x1] }
  0xe1   :  { %1409 = vst.msk [vmem:[#allocation3 + $0x100] sm:$0xff] %vm531_vm13, %v3020_v11  ;;  %v3064_v32 = vrot.slane %v1984_v19, 9  ;;  %v3080_v58 = vcombine.low %v2063_v36, %v2067_v54  ;;  %v2079_v59 = vsel %vm3594_vm12, %v3070_v26, %v2078_v43  ;;  %v1994_v3 = vld [vmem:[#allocation2 + $0x48] sm:$0xe]  ;;  %v3068_v13 = vrot.slane %v1992_v56, 9 }
  0xe2   :  { %v1365_v42 = vrot.slane %v1364_v2, 4  ;;  %v2070_v62 = vrot.slane %v1993_v61, 5  ;;  %v3069_v63 = vrot.slane %v1994_v3, 9  ;;  %v2001_v14 = vld [vmem:[#allocation2 + $0x74] sm:$0x1] }
  0xe3   :  { %v2165_v39 = vld [vmem:[#allocation3 + $0x88] sm:$0xff]  ;;  %v2055_v38 = vsel %vm3594_vm12, %v3064_v32, %v2054_v37  ;;  %2142 = vst.msk [vmem:[#allocation3 + $0x70] sm:$0xff] %vm531_vm13, %v3080_v58  ;;  %v2002_v0 = vld [vmem:[#allocation2 + $0x78] sm:$0xe]  ;;  %v2003_v20 = vld [vmem:[#allocation2 + $0x7c] sm:$0x1] }
  0xe4   :  { %2654 = vmatmul.mubr.bf16.gmra.mrb[12].mxu1 %v2165_v39  ;;  %v2174_v29 = vld [vmem:[#allocation3 + $0xd0] sm:$0xff]  ;;  %v1356_v39 = vsel %vm3565_vm9, %v1351_v30, %v1355_v60  ;;  %v3079_v5 = vcombine.low %v2055_v38, %v2059_v4  ;;  %v1995_v60 = vld [vmem:[#allocation2 + $0x4c] sm:$0x1]  ;;  %v2086_v27 = vrot.slane %v2001_v14, 5  ;;  %v3073_v28 = vrot.slane %v2002_v0, 9 }
  0xe5   :  { %2572 = vmatprep.mubr.bf16.mxu0 %v2174_v29  ;;  %v1370_v29 = vsel %vm3565_vm9, %v1365_v42, %v1369_v10  ;;  %v2074_v8 = vrot.slane %v1995_v60, 5  ;;  %v2000_v10 = vld [vmem:[#allocation2 + $0x70] sm:$0xe]  ;;  %v2004_v24 = vld [vmem:[#allocation2 + $0x80] sm:$0xe]  ;;  %v2090_v31 = vrot.slane %v2003_v20, 5 }
  0xe6   :  { %v3021_v25 = vcombine.low %v1356_v39, %v1370_v29  ;;  %2141 = vst.msk [vmem:[#allocation3 + $0x48] sm:$0xff] %vm531_vm13, %v3079_v5  ;;  %v3072_v17 = vrot.slane %v2000_v10, 9  ;;  %v2005_v15 = vld [vmem:[#allocation2 + $0x84] sm:$0x1]  ;;  %v2006_v32 = vld [vmem:[#allocation2 + $0x88] sm:$0xe] }
  0xe7   :  { %v2075_v2 = vsel %vm3594_vm12, %v3069_v63, %v2074_v8  ;;  %v3074_v42 = vrot.slane %v2004_v24, 9  ;;  %v2094_v1 = vrot.slane %v2005_v15, 5  ;;  %v3075_v35 = vrot.slane %v2006_v32, 9  ;;  %v2008_v39 = vld [vmem:[#allocation2 + $0x90] sm:$0xe] }
  0xe8   :  { %1410 = vst.msk [vmem:[#allocation3 + $0x128] sm:$0xff] %vm531_vm13, %v3021_v25  ;;  %v2087_v37 = vsel %vm3594_vm12, %v3072_v17, %v2086_v27  ;;  %v2091_v44 = vsel %vm3594_vm12, %v3073_v28, %v2090_v31  ;;  %v2009_v45 = vld [vmem:[#allocation2 + $0x94] sm:$0x1]  ;;  %v2010_v41 = vld [vmem:[#allocation2 + $0x98] sm:$0xe]  ;;  %v3076_v29 = vrot.slane %v2008_v39, 9 }
  0xe9   :  { %v834_v55 = vpop.permute.xlu0 %833  ;;  %v3083_v46 = vcombine.low %v2087_v37, %v2091_v44  ;;  %v2095_v47 = vsel %vm3594_vm12, %v3074_v42, %v2094_v1  ;;  %v2102_v4 = vrot.slane %v2009_v45, 5  ;;  %v3077_v22 = vrot.slane %v2010_v41, 9 }
  0xea   :  { %853 = vst.msk [vmem:[#allocation3 + $0xc8] sm:$0xff] %vm847_vm14, %v834_v55  ;;  %v3071_v55 = vrot.slane %v1998_v40, 9 }
  0xec   :  { %v1957_v12 = vpop.permute.xlu1 %1956 }
  0xed   :  { %1976 = vst.msk [vmem:[#allocation3 + $0xb8] sm:$0xff] %vm847_vm14, %v1957_v12  ;;  %v1096_v57 = vpop.permute.xlu0 %1095  ;;  %v2083_v12 = vsel %vm3594_vm12, %v3071_v55, %v2082_v33 }
  0xee   :  { %1113 = vst.msk [vmem:[#allocation3 + $0xf8] sm:$0xff] %vm847_vm14, %v1096_v57  ;;  %v3082_v11 = vcombine.low %v2079_v59, %v2083_v12  ;;  %v2071_v57 = vsel %vm3594_vm12, %v3068_v13, %v2070_v62 }
  0xef   :  { %v3081_v30 = vcombine.low %v2071_v57, %v2075_v2 }
  0xf0   :  { %v1572_v21 = vpop.permute.xlu1 %1571  ;;  %2144 = vst.msk [vmem:[#allocation3 + $0xc0] sm:$0xff] %vm531_vm13, %v3082_v11 }
  0xf1   :  { %1591 = vst.msk [vmem:[#allocation3 + $0xb0] sm:$0xff] %vm847_vm14, %v1572_v21  ;;  %v2173_v9 = vld [vmem:[#allocation3 + $0xc8] sm:$0xff] }
  0xf2   :  { %2573 = vmatmul.mubr.bf16.gmra.mrb[20].mxu0 %v2173_v9  ;;  %v2007_v21 = vld [vmem:[#allocation2 + $0x8c] sm:$0x1]  ;;  %2143 = vst.msk [vmem:[#allocation3 + $0x98] sm:$0xff] %vm531_vm13, %v3081_v30  ;;  %v2011_v9 = vld [vmem:[#allocation2 + $0x9c] sm:$0x1] }
  0xf3   :  { %v2098_v23 = vrot.slane %v2007_v21, 5  ;;  %v2106_v50 = vrot.slane %v2011_v9, 5 }
  0xf4   :  { %v2171_v16 = vld [vmem:[#allocation3 + $0xb8] sm:$0xff] }
  0xf5   :  { %2661 = vmatprep.mubr.bf16.mxu1 %v2171_v16  ;;  %v2179_v49 = vld [vmem:[#allocation3 + $0xf8] sm:$0xff]  ;;  %v2099_v48 = vsel %vm3594_vm12, %v3075_v35, %v2098_v23 }
  0xf6   :  { %2580 = vmatprep.mubr.bf16.mxu0 %v2179_v49 }
  0xf8   :  { %v2170_v6 = vld [vmem:[#allocation3 + $0xb0] sm:$0xff]  ;;  %v836_v18 = vpop.permute.xlu0 %835 }
  0xf9   :  { %v1959_v19 = vpop.permute.xlu1 %1958  ;;  %2662 = vmatmul.mubr.bf16.gmra.mrb[16].mxu1 %v2170_v6  ;;  %854 = vst.msk [vmem:[#allocation3 + $0xf0] sm:$0xff] %vm847_vm14, %v836_v18 }
  0xfa   :  { %1977 = vst.msk [vmem:[#allocation3 + $0xe0] sm:$0xff] %vm847_vm14, %v1959_v19 }
  0xfd   :  { %v1574_v38 = vpop.permute.xlu1 %1573 }
  0xfe   :  { %1592 = vst.msk [vmem:[#allocation3 + $0xd8] sm:$0xff] %vm847_vm14, %v1574_v38 }
  0xff   :  { %10 = vsyncpa [#allocation7], 0  ;;  %2145 = vst.msk [vmem:[#allocation3 + $0xe8] sm:$0xff] %vm531_vm13, %v3083_v46  ;;  %v3084_v25 = vcombine.low %v2095_v47, %v2099_v48  ;;  %v2103_v5 = vsel %vm3594_vm12, %v3076_v29, %v2102_v4  ;;  %v2107_v51 = vsel %vm3594_vm12, %v3077_v22, %v2106_v50  ;;  %v2152_v54 = vld [vmem:[#allocation3 + $0x20] sm:$0xff]  ;;  %v2157_v58 = vld [vmem:[#allocation3 + $0x48] sm:$0xff]  ;;  %s3433_s1 = smov [#allocation4]  }
 0x100   :  { %v2178_v53 = vld [vmem:[#allocation3 + $0xf0] sm:$0xff]  ;;  %v3085_v40 = vcombine.low %v2103_v5, %v2107_v51  ;;  %v2172_v13 = vld [vmem:[#allocation3 + $0xc0] sm:$0xff]  ;;  %v2167_v12 = vld [vmem:[#allocation3 + $0x98] sm:$0xff]  ;;  %s2925_s11 = sshll.u32 %s3433_s1, 4  ;;  %s2926_s11 = int_to_ptr.vmem [resolvable:$true] %s2925_s11 }
 0x101   :  { %v2176_v52 = vld [vmem:[#allocation3 + $0xe0] sm:$0xff]  ;;  %2146 = vst.msk [vmem:[#allocation3 + $0x110] sm:$0xff] %vm531_vm13, %v3084_v25  ;;  %2581 = vmatmul.mubr.bf16.gmra.mrb[24].mxu0 %v2178_v53  ;;  %v1098_v16 = vpop.permute.xlu0 %1097  ;;  %v2162_v59 = vld [vmem:[#allocation3 + $0x70] sm:$0xff]  ;;  %s3383_s12 = scalar_lea.vmem %s2926_s11, 1024  ;;  %p3388_p1 = scmp.lt.s32.totalorder %s2926_s11, %s2926_s11 }
 0x102   :  { %2669 = vmatprep.mubr.bf16.mxu1 %v2176_v52  ;;  %2147 = vst.msk [vmem:[#allocation3 + $0x138] sm:$0xff] %vm531_vm13, %v3085_v40  ;;  %p3384_p0 = scmp.ne.s32.totalorder %s2926_s11, %s3383_s12  ;;  %p3389_p2 = scmp.lt.s32.totalorder %s3383_s12, %s3383_s12 }
 0x103   :  { %1114 = vst.msk [vmem:[#allocation3 + $0x120] sm:$0xff] %vm847_vm14, %v1098_v16 }
 0x104   :  { %p3390_p3 = por %p3389_p2, %p3388_p1 }
 0x105   :  { %v2175_v36 = vld [vmem:[#allocation3 + $0xd8] sm:$0xff] }
 0x106   :  { %2670 = vmatmul.mubr.bf16.gmra.mrb[20].mxu1 %v2175_v36  ;;  %v2177_v62 = vld [vmem:[#allocation3 + $0xe8] sm:$0xff]  ;;  %p3391_p4 = pnand %p3390_p3, %p3384_p0 }
 0x108   :  { %v2182_v63 = vld [vmem:[#allocation3 + $0x110] sm:$0xff] }
 0x109   :  { %v2187_v8 = vld [vmem:[#allocation3 + $0x138] sm:$0xff] }
 0x10a   :  { %v2184_v7 = vld [vmem:[#allocation3 + $0x120] sm:$0xff] }
 0x10b   :  { %2588 = vmatprep.mubr.bf16.mxu0 %v2184_v7 }
 0x10e   :  { %v1576_v26 = vpop.permute.xlu1 %1575 }
 0x10f   :  { %1593 = vst.msk [vmem:[#allocation3 + $0x100] sm:$0xff] %vm847_vm14, %v1576_v26 }
 0x110   :  { %v838_v34 = vpop.permute.xlu0 %837 }
 0x111   :  { %855 = vst.msk [vmem:[#allocation3 + $0x118] sm:$0xff] %vm847_vm14, %v838_v34 }
 0x112   :  { %v1578_v43 = vpop.permute.xlu1 %1577 }
 0x113   :  { %1594 = vst.msk [vmem:[#allocation3 + $0x128] sm:$0xff] %vm847_vm14, %v1578_v43 }
 0x114   :  { %v1961_v55 = vpop.permute.xlu0 %1960 }
 0x115   :  { %1978 = vst.msk [vmem:[#allocation3 + $0x108] sm:$0xff] %vm847_vm14, %v1961_v55 }
 0x116   :  { %v2180_v61 = vld [vmem:[#allocation3 + $0x100] sm:$0xff] }
 0x118   :  { %v1963_v33 = vpop.permute.xlu0 %1962  ;;  %v2183_v56 = vld [vmem:[#allocation3 + $0x118] sm:$0xff] }
 0x119   :  { %1979 = vst.msk [vmem:[#allocation3 + $0x130] sm:$0xff] %vm847_vm14, %v1963_v33  ;;  %2589 = vmatmul.mubr.bf16.gmra.mrb[28].mxu0 %v2183_v56 }
 0x11a   :  { %3294 = vmatprep.mubr.msk.bf16.mxu0 %vm531_vm13, %v2152_v54  ;;  %v2185_v60 = vld [vmem:[#allocation3 + $0x128] sm:$0xff] }
 0x11c   :  { %v2181_v49 = vld [vmem:[#allocation3 + $0x108] sm:$0xff] }
 0x11d   :  { %2677 = vmatprep.mubr.bf16.mxu1 %v2181_v49 }
 0x11e   :  { %2678 = vmatmul.mubr.bf16.gmra.mrb[24].mxu1 %v2180_v61 }
 0x120   :  { %v2186_v3 = vld [vmem:[#allocation3 + $0x130] sm:$0xff] }
 0x121   :  { %2685 = vmatprep.mubr.bf16.mxu1 %v2186_v3  ;;  %3295 = vmatmul.mubr.msk.bf16.vlgmr.msra.gmra.mrb[32].mxu0 %vm531_vm13, %v2157_v58 }
 0x122   :  { %3298 = vmatprep.mubr.msk.bf16.mxu0 %vm531_vm13, %v2162_v59 }
 0x126   :  { %2686 = vmatmul.mubr.bf16.gmra.mrb[28].mxu1 %v2185_v60 }
 0x127   :  { %3302 = vmatprep.mubr.msk.bf16.mxu1 %vm531_vm13, %v2172_v13 }
 0x129   :  { %3299 = vmatmul.mubr.msk.bf16.gmra.mrb[36].mxu0 %vm531_vm13, %v2167_v12 }
 0x12e   :  { %3303 = vmatmul.mubr.msk.bf16.vlgmr.msra.gmra.mrb[32].mxu1 %vm531_vm13, %v2177_v62 }
 0x12f   :  { %3306 = vmatprep.mubr.msk.bf16.mxu1 %vm531_vm13, %v2182_v63 }
 0x136   :  { %3307 = vmatmul.mubr.msk.bf16.gmra.mrb[36].mxu1 %vm531_vm13, %v2187_v8 }
 0x180   :  { %v3162_v10 = vpop.f32.mrb[0].mxu0 }
 0x181   :  { %v3163_v6 = vpop.f32.mrb[1].mxu0 }
 0x182   :  { %v3164_v11 = vadd.f32 %v3163_v6, %v3162_v10  ;;  %v3165_v14 = vpop.f32.mrb[2].mxu0 }
 0x183   :  { %v3166_v0 = vpop.f32.mrb[3].mxu0 }
 0x184   :  { %v3167_v17 = vadd.f32 %v3166_v0, %v3165_v14 }
 0x188   :  { %v3168_v18 = vpop.f32.mrb[4].mxu0 }
 0x189   :  { %v3169_v19 = vpop.f32.mrb[5].mxu0 }
 0x18a   :  { %v3170_v57 = vadd.f32 %v3169_v19, %v3168_v18  ;;  %v3171_v2 = vpop.f32.mrb[6].mxu0  ;;  %v3226_v32 = vpop.f32.mrb[0].mxu1 }
 0x18b   :  { %v3172_v20 = vpop.f32.mrb[7].mxu0  ;;  %v3227_v21 = vpop.f32.mrb[1].mxu1 }
 0x18c   :  { %v3173_v27 = vadd.f32 %v3172_v20, %v3171_v2  ;;  %v3228_v42 = vadd.f32 %v3227_v21, %v3226_v32  ;;  %v3229_v1 = vpop.f32.mrb[2].mxu1 }
 0x18d   :  { %v3230_v35 = vpop.f32.mrb[3].mxu1 }
 0x18e   :  { %v3231_v44 = vadd.f32 %v3230_v35, %v3229_v1  ;;  %v4305_v23 = vadd.f32 %v3228_v42, %v3164_v11 }
 0x190   :  { %v3174_v28 = vpop.f32.mrb[8].mxu0  ;;  %v4307_v39 = vadd.f32 %v3231_v44, %v3167_v17 }
 0x191   :  { %v3175_v24 = vpop.f32.mrb[9].mxu0 }
 0x192   :  { %v3176_v30 = vadd.f32 %v3175_v24, %v3174_v28  ;;  %v3177_v31 = vpop.f32.mrb[10].mxu0  ;;  %v3232_v45 = vpop.f32.mrb[4].mxu1 }
 0x193   :  { %v3178_v15 = vpop.f32.mrb[11].mxu0  ;;  %v3233_v38 = vpop.f32.mrb[5].mxu1 }
 0x194   :  { %v3179_v37 = vadd.f32 %v3178_v15, %v3177_v31  ;;  %v3234_v46 = vadd.f32 %v3233_v38, %v3232_v45  ;;  %v3235_v47 = vpop.f32.mrb[6].mxu1 }
 0x195   :  { %v3236_v41 = vpop.f32.mrb[7].mxu1 }
 0x196   :  { %v3237_v9 = vadd.f32 %v3236_v41, %v3235_v47  ;;  %v4309_v29 = vadd.f32 %v3234_v46, %v3170_v57 }
 0x198   :  { %v4311_v4 = vadd.f32 %v3237_v9, %v3173_v27 }
 0x1a4   :  { %v3180_v48 = vpop.f32.mrb[12].mxu0 }
 0x1a5   :  { %v3181_v22 = vpop.f32.mrb[13].mxu0 }
 0x1a6   :  { %v3182_v50 = vadd.f32 %v3181_v22, %v3180_v48  ;;  %v3183_v25 = vpop.f32.mrb[14].mxu0 }
 0x1a7   :  { %v3184_v5 = vpop.f32.mrb[15].mxu0 }
 0x1a8   :  { %v3185_v52 = vadd.f32 %v3184_v5, %v3183_v25 }
 0x1a9   :  { %v3238_v51 = vpop.f32.mrb[8].mxu1 }
 0x1aa   :  { %v3239_v53 = vpop.f32.mrb[9].mxu1 }
 0x1ab   :  { %v3240_v40 = vadd.f32 %v3239_v53, %v3238_v51  ;;  %v3241_v16 = vpop.f32.mrb[10].mxu1 }
 0x1ac   :  { %v3242_v36 = vpop.f32.mrb[11].mxu1 }
 0x1ad   :  { %v3243_v7 = vadd.f32 %v3242_v36, %v3241_v16  ;;  %v3186_v26 = vpop.f32.mrb[16].mxu0  ;;  %v4313_v34 = vadd.f32 %v3240_v40, %v3176_v30 }
 0x1ae   :  { %v3187_v43 = vpop.f32.mrb[17].mxu0 }
 0x1af   :  { %v3188_v55 = vadd.f32 %v3187_v43, %v3186_v26  ;;  %v3189_v54 = vpop.f32.mrb[18].mxu0  ;;  %v4315_v33 = vadd.f32 %v3243_v7, %v3179_v37 }
 0x1b0   :  { %v3190_v56 = vpop.f32.mrb[19].mxu0 }
 0x1b1   :  { %v3191_v61 = vadd.f32 %v3190_v56, %v3189_v54 }
 0x1b7   :  { %v3244_v49 = vpop.f32.mrb[12].mxu1 }
 0x1b8   :  { %v3245_v58 = vpop.f32.mrb[13].mxu1 }
 0x1b9   :  { %v3246_v59 = vadd.f32 %v3245_v58, %v3244_v49  ;;  %v3247_v3 = vpop.f32.mrb[14].mxu1 }
 0x1ba   :  { %v3248_v60 = vpop.f32.mrb[15].mxu1 }
 0x1bb   :  { %v3249_v13 = vadd.f32 %v3248_v60, %v3247_v3  ;;  %v4317_v12 = vadd.f32 %v3246_v59, %v3182_v50 }
 0x1bd   :  { %v4319_v62 = vadd.f32 %v3249_v13, %v3185_v52 }
 0x1c5   :  { %v3192_v63 = vpop.f32.mrb[20].mxu0 }
 0x1c6   :  { %v3193_v8 = vpop.f32.mrb[21].mxu0 }
 0x1c7   :  { %v3194_v10 = vadd.f32 %v3193_v8, %v3192_v63  ;;  %v3195_v6 = vpop.f32.mrb[22].mxu0 }
 0x1c8   :  { %v3196_v11 = vpop.f32.mrb[23].mxu0 }
 0x1c9   :  { %v3197_v14 = vadd.f32 %v3196_v11, %v3195_v6 }
 0x1cc   :  { %v3250_v0 = vpop.f32.mrb[16].mxu1 }
 0x1cd   :  { %v3251_v17 = vpop.f32.mrb[17].mxu1 }
 0x1ce   :  { %v3252_v18 = vadd.f32 %v3251_v17, %v3250_v0  ;;  %v3253_v19 = vpop.f32.mrb[18].mxu1 }
 0x1cf   :  { %v3254_v57 = vpop.f32.mrb[19].mxu1 }
 0x1d0   :  { %v3255_v2 = vadd.f32 %v3254_v57, %v3253_v19  ;;  %v4321_v20 = vadd.f32 %v3252_v18, %v3188_v55 }
 0x1d2   :  { %v4323_v27 = vadd.f32 %v3255_v2, %v3191_v61 }
 0x1d4   :  { %v3198_v28 = vpop.f32.mrb[24].mxu0 }
 0x1d5   :  { %v3199_v24 = vpop.f32.mrb[25].mxu0 }
 0x1d6   :  { %v3200_v30 = vadd.f32 %v3199_v24, %v3198_v28  ;;  %v3201_v31 = vpop.f32.mrb[26].mxu0 }
 0x1d7   :  { %v3202_v15 = vpop.f32.mrb[27].mxu0 }
 0x1d8   :  { %v3203_v37 = vadd.f32 %v3202_v15, %v3201_v31 }
 0x1d9   :  { %v3256_v32 = vpop.f32.mrb[20].mxu1 }
 0x1da   :  { %v3257_v21 = vpop.f32.mrb[21].mxu1 }
 0x1db   :  { %v3258_v42 = vadd.f32 %v3257_v21, %v3256_v32  ;;  %v3259_v1 = vpop.f32.mrb[22].mxu1 }
 0x1dc   :  { %v3260_v35 = vpop.f32.mrb[23].mxu1 }
 0x1dd   :  { %v3261_v44 = vadd.f32 %v3260_v35, %v3259_v1  ;;  %v4325_v45 = vadd.f32 %v3258_v42, %v3194_v10 }
 0x1df   :  { %v4327_v38 = vadd.f32 %v3261_v44, %v3197_v14 }
 0x1ec   :  { %v3204_v46 = vpop.f32.mrb[28].mxu0 }
 0x1ed   :  { %v3205_v47 = vpop.f32.mrb[29].mxu0 }
 0x1ee   :  { %v3206_v41 = vadd.f32 %v3205_v47, %v3204_v46  ;;  %v3207_v9 = vpop.f32.mrb[30].mxu0 }
 0x1ef   :  { %v3208_v48 = vpop.f32.mrb[31].mxu0 }
 0x1f0   :  { %v4329_v22 = vadd.f32 %v3208_v48, %v3207_v9 }
 0x1f1   :  { %v3262_v50 = vpop.f32.mrb[24].mxu1 }
 0x1f2   :  { %v3263_v25 = vpop.f32.mrb[25].mxu1 }
 0x1f3   :  { %v3264_v5 = vadd.f32 %v3263_v25, %v3262_v50  ;;  %v3265_v51 = vpop.f32.mrb[26].mxu1 }
 0x1f4   :  { %v3266_v52 = vpop.f32.mrb[27].mxu1  ;;  %v3296_v53 = vpop.f32.mrb[32].mxu0 }
 0x1f5   :  { %v3267_v40 = vadd.f32 %v3266_v52, %v3265_v51  ;;  %v2737_v16 = vadd.f32 %v3296_v53, %v4309_v29  ;;  %v2728_v36 = vpop.f32.mrb[33].mxu0  ;;  %v4332_v7 = vadd.f32 %v3264_v5, %v3200_v30 }
 0x1f6   :  { %v2729_v26 = vadd.f32 %v2728_v36, %v4305_v23  ;;  %v3297_v43 = vpop.f32.mrb[34].mxu0 }
 0x1f7   :  { %v2890_v55 = vpack.c.bf16 %v2737_v16, %v2737_v16  ;;  %v2740_v54 = vadd.f32 %v3297_v43, %v4311_v4  ;;  %v2731_v56 = vpop.f32.mrb[35].mxu0  ;;  %v2831_v3 = vmul.f32 %v2737_v16, %v2737_v16  ;;  %v4342_v11 = vadd.f32 %v3267_v40, %v3203_v37 }
 0x1f8   :  { %v2829_v61 = vmul.f32 %v2729_v26, %v2729_v26  ;;  %v2888_v49 = vpack.c.bf16 %v2729_v26, %v2729_v26  ;;  %v2732_v58 = vadd.f32 %v2731_v56, %v4307_v39  ;;  %v2791_v13 = vsel %vm531_vm13, %v2729_v26, 0.0 }
 0x1f9   :  { %v3268_v59 = vpop.f32.mrb[28].mxu1  ;;  %2906 = vst.msk [vmem:[#allocation4 + $0x8] sm:$0xf] %vm48_vm4, %v2890_v55  ;;  %v2891_v60 = vpack.c.bf16 %v2740_v54, %v2740_v54  ;;  %v2832_v6 = vmul.f32 %v2740_v54, %v2740_v54  ;;  %v2794_v14 = vsel %vm531_vm13, %v2737_v16, 0.0  ;;  %v2848_v31 = vsel %vm531_vm13, %v2831_v3, 0.0 }
 0x1fa   :  { %v3269_v29 = vpop.f32.mrb[29].mxu1  ;;  %2904 = vst.msk [vmem:[#allocation4] sm:$0xf] %vm48_vm4, %v2888_v49  ;;  %v2792_v23 = vsel %vm531_vm13, %v2732_v58, 0.0  ;;  %v2830_v63 = vmul.f32 %v2732_v58, %v2732_v58  ;;  %v2889_v8 = vpack.c.bf16 %v2732_v58, %v2732_v58  ;;  %v2845_v0 = vsel %vm531_vm13, %v2829_v61, 0.0 }
 0x1fb   :  { %v3270_v4 = vadd.f32 %v3269_v29, %v3268_v59  ;;  %v3271_v10 = vpop.f32.mrb[30].mxu1  ;;  %2907 = vst.msk [vmem:[#allocation4 + $0xc] sm:$0xf] %vm48_vm4, %v2891_v60  ;;  %v2793_v39 = vadd.f32 %v2792_v23, %v2791_v13  ;;  %v2796_v21 = vsel %vm531_vm13, %v2740_v54, 0.0  ;;  %v2850_v42 = vsel %vm531_vm13, %v2832_v6, 0.0 }
 0x1fc   :  { %v3272_v17 = vpop.f32.mrb[31].mxu1  ;;  %v2846_v18 = vsel %vm531_vm13, %v2830_v63, 0.0  ;;  %2905 = vst.msk [vmem:[#allocation4 + $0x4] sm:$0xf] %vm48_vm4, %v2889_v8  ;;  %v3300_v19 = vpop.f32.mrb[36].mxu0 }
 0x1fd   :  { %v3273_v57 = vadd.f32 %v3272_v17, %v3271_v10  ;;  %v2795_v2 = vadd.f32 %v2794_v14, %v2793_v39  ;;  %v2847_v28 = vadd.f32 %v2846_v18, %v2845_v0  ;;  %v2753_v24 = vadd.f32 %v3300_v19, %v4317_v12  ;;  %v2744_v30 = vpop.f32.mrb[37].mxu0 }
 0x1fe   :  { %v2745_v15 = vadd.f32 %v2744_v30, %v4313_v34  ;;  %v3301_v32 = vpop.f32.mrb[38].mxu0  ;;  %v2688_v37 = vadd.f32 %v3270_v4, %v3206_v41 }
 0x1ff   :  { %v2849_v1 = vadd.f32 %v2848_v31, %v2847_v28  ;;  %v2894_v35 = vpack.c.bf16 %v2753_v24, %v2753_v24  ;;  %v2747_v44 = vpop.f32.mrb[39].mxu0  ;;  %v2797_v46 = vadd.f32 %v2796_v21, %v2795_v2  ;;  %v2756_v34 = vadd.f32 %v3301_v32, %v4319_v62 }
 0x200   :  { %v2798_v47 = vsel %vm531_vm13, %v2745_v15, 0.0  ;;  %v2833_v9 = vmul.f32 %v2745_v15, %v2745_v15  ;;  %v2892_v48 = vpack.c.bf16 %v2745_v15, %v2745_v15  ;;  %v2748_v41 = vadd.f32 %v2747_v44, %v4315_v33 }
 0x201   :  { %2910 = vst.msk [vmem:[#allocation4 + $0x18] sm:$0xf] %vm48_vm4, %v2894_v35  ;;  %v3304_v12 = vpop.f32.mrb[32].mxu1  ;;  %v2851_v50 = vadd.f32 %v2850_v42, %v2849_v1  ;;  %v2799_v5 = vadd.f32 %v2798_v47, %v2797_v46  ;;  %v2691_v53 = vadd.f32 %v3273_v57, %v4329_v22  ;;  %v2895_v43 = vpack.c.bf16 %v2756_v34, %v2756_v34 }
 0x202   :  { %v2769_v25 = vadd.f32 %v3304_v12, %v4325_v45  ;;  %v2852_v51 = vsel %vm531_vm13, %v2833_v9, 0.0  ;;  %2908 = vst.msk [vmem:[#allocation4 + $0x10] sm:$0xf] %vm48_vm4, %v2892_v48  ;;  %v2760_v52 = vpop.f32.mrb[33].mxu1  ;;  %v2835_v62 = vmul.f32 %v2753_v24, %v2753_v24  ;;  %v2800_v45 = vsel %vm531_vm13, %v2748_v41, 0.0 }
 0x203   :  { %v2853_v40 = vadd.f32 %v2852_v51, %v2851_v50  ;;  %v2761_v16 = vadd.f32 %v2760_v52, %v4321_v20  ;;  %v3305_v36 = vpop.f32.mrb[34].mxu1  ;;  %2911 = vst.msk [vmem:[#allocation4 + $0x1c] sm:$0xf] %vm48_vm4, %v2895_v43  ;;  %v2834_v56 = vmul.f32 %v2748_v41, %v2748_v41  ;;  %v2801_v22 = vadd.f32 %v2800_v45, %v2799_v5 }
 0x204   :  { %v2898_v26 = vpack.c.bf16 %v2769_v25, %v2769_v25  ;;  %v2763_v55 = vpop.f32.mrb[35].mxu1  ;;  %v2772_v33 = vadd.f32 %v3305_v36, %v4327_v38  ;;  %v2893_v61 = vpack.c.bf16 %v2748_v41, %v2748_v41  ;;  %v2802_v49 = vsel %vm531_vm13, %v2753_v24, 0.0 }
 0x205   :  { %v2896_v54 = vpack.c.bf16 %v2761_v16, %v2761_v16  ;;  %v2764_v20 = vadd.f32 %v2763_v55, %v4323_v27  ;;  %v2836_v58 = vmul.f32 %v2756_v34, %v2756_v34  ;;  %v2854_v3 = vsel %vm531_vm13, %v2834_v56, 0.0 }
 0x206   :  { %2914 = vst.msk [vmem:[#allocation4 + $0x28] sm:$0xf] %vm48_vm4, %v2898_v26  ;;  %v2899_v59 = vpack.c.bf16 %v2772_v33, %v2772_v33  ;;  %v2856_v60 = vsel %vm531_vm13, %v2835_v62, 0.0  ;;  %v2803_v29 = vadd.f32 %v2802_v49, %v2801_v22  ;;  %v2855_v13 = vadd.f32 %v2854_v3, %v2853_v40  ;;  %2909 = vst.msk [vmem:[#allocation4 + $0x14] sm:$0xf] %vm48_vm4, %v2893_v61 }
 0x207   :  { %2912 = vst.msk [vmem:[#allocation4 + $0x20] sm:$0xf] %vm48_vm4, %v2896_v54  ;;  %v2837_v23 = vmul.f32 %v2761_v16, %v2761_v16  ;;  %v2804_v63 = vsel %vm531_vm13, %v2756_v34, 0.0  ;;  %v2897_v8 = vpack.c.bf16 %v2764_v20, %v2764_v20  ;;  %v2806_v10 = vsel %vm531_vm13, %v2761_v16, 0.0 }
 0x208   :  { %2915 = vst.msk [vmem:[#allocation4 + $0x2c] sm:$0xf] %vm48_vm4, %v2899_v59  ;;  %v2857_v6 = vadd.f32 %v2856_v60, %v2855_v13  ;;  %v2805_v39 = vadd.f32 %v2804_v63, %v2803_v29  ;;  %v2858_v17 = vsel %vm531_vm13, %v2836_v58, 0.0  ;;  %v2838_v18 = vmul.f32 %v2764_v20, %v2764_v20 }
 0x209   :  { %v3308_v38 = vpop.f32.mrb[36].mxu1  ;;  %2913 = vst.msk [vmem:[#allocation4 + $0x24] sm:$0xf] %vm48_vm4, %v2897_v8  ;;  %v2839_v30 = vmul.f32 %v2769_v25, %v2769_v25  ;;  %v2860_v31 = vsel %vm531_vm13, %v2837_v23, 0.0  ;;  %v2808_v15 = vsel %vm531_vm13, %v2764_v20, 0.0  ;;  %v2810_v42 = vsel %vm531_vm13, %v2769_v25, 0.0 }
 0x20a   :  { %v2785_v27 = vadd.f32 %v3308_v38, %v2688_v37  ;;  %v2776_v4 = vpop.f32.mrb[37].mxu1  ;;  %v2807_v28 = vadd.f32 %v2806_v10, %v2805_v39  ;;  %v2859_v24 = vadd.f32 %v2858_v17, %v2857_v6  ;;  %v2840_v1 = vmul.f32 %v2772_v33, %v2772_v33 }
 0x20b   :  { %v2777_v14 = vadd.f32 %v2776_v4, %v4332_v7  ;;  %v3309_v0 = vpop.f32.mrb[38].mxu1  ;;  %v2862_v35 = vsel %vm531_vm13, %v2838_v18, 0.0  ;;  %v2864_v9 = vsel %vm531_vm13, %v2839_v30, 0.0  ;;  %v2812_v48 = vsel %vm531_vm13, %v2772_v33, 0.0 }
 0x20c   :  { %v2902_v19 = vpack.c.bf16 %v2785_v27, %v2785_v27  ;;  %v2788_v57 = vadd.f32 %v3309_v0, %v2691_v53  ;;  %v2779_v2 = vpop.f32.mrb[39].mxu1  ;;  %v2809_v7 = vadd.f32 %v2808_v15, %v2807_v28  ;;  %v2861_v37 = vadd.f32 %v2860_v31, %v2859_v24 }
 0x20d   :  { %v2900_v32 = vpack.c.bf16 %v2777_v14, %v2777_v14  ;;  %v2780_v44 = vadd.f32 %v2779_v2, %v4342_v11  ;;  %v2841_v12 = vmul.f32 %v2777_v14, %v2777_v14  ;;  %v2866_v25 = vsel %vm531_vm13, %v2840_v1, 0.0 }
 0x20e   :  { %2918 = vst.msk [vmem:[#allocation4 + $0x38] sm:$0xf] %vm48_vm4, %v2902_v19  ;;  %v2903_v21 = vpack.c.bf16 %v2788_v57, %v2788_v57  ;;  %v2811_v46 = vadd.f32 %v2810_v42, %v2809_v7  ;;  %v2863_v47 = vadd.f32 %v2862_v35, %v2861_v37  ;;  %v2814_v5 = vsel %vm531_vm13, %v2777_v14, 0.0 }
 0x20f   :  { %2916 = vst.msk [vmem:[#allocation4 + $0x30] sm:$0xf] %vm48_vm4, %v2900_v32  ;;  %v2901_v50 = vpack.c.bf16 %v2780_v44, %v2780_v44  ;;  %v2842_v51 = vmul.f32 %v2780_v44, %v2780_v44  ;;  %v2843_v53 = vmul.f32 %v2785_v27, %v2785_v27  ;;  %v2868_v40 = vsel %vm531_vm13, %v2841_v12, 0.0 }
 0x210   :  { %2919 = vst.msk [vmem:[#allocation4 + $0x3c] sm:$0xf] %vm48_vm4, %v2903_v21  ;;  %v2865_v34 = vadd.f32 %v2864_v9, %v2863_v47  ;;  %v2813_v41 = vadd.f32 %v2812_v48, %v2811_v46  ;;  %v2816_v16 = vsel %vm531_vm13, %v2780_v44, 0.0  ;;  %v2818_v43 = vsel %vm531_vm13, %v2785_v27, 0.0 }
 0x211   :  { %2917 = vst.msk [vmem:[#allocation4 + $0x34] sm:$0xf] %vm48_vm4, %v2901_v50  ;;  %v2844_v55 = vmul.f32 %v2788_v57, %v2788_v57  ;;  %v2870_v62 = vsel %vm531_vm13, %v2842_v51, 0.0  ;;  %v2872_v45 = vsel %vm531_vm13, %v2843_v53, 0.0  ;;  %v2820_v56 = vsel %vm531_vm13, %v2788_v57, 0.0 }
 0x212   :  { %v2815_v11 = vadd.f32 %v2814_v5, %v2813_v41  ;;  %v2867_v52 = vadd.f32 %v2866_v25, %v2865_v34 }
 0x213   :  { %v2874_v20 = vsel %vm531_vm13, %v2844_v55, 0.0 }
 0x214   :  { %v2869_v36 = vadd.f32 %v2868_v40, %v2867_v52  ;;  %v2817_v26 = vadd.f32 %v2816_v16, %v2815_v11 }
 0x216   :  { %v2819_v54 = vadd.f32 %v2818_v43, %v2817_v26  ;;  %v2871_v33 = vadd.f32 %v2870_v62, %v2869_v36 }
 0x218   :  { %v2821_v22 = vadd.f32 %v2820_v56, %v2819_v54  ;;  %v2873_v61 = vadd.f32 %v2872_v45, %v2871_v33 }
 0x21a   :  { %v2875_v49 = vadd.f32 %v2874_v20, %v2873_v61  ;;  %v2822_v58 = vrot.slane %v2821_v22, 4 }
 0x21c   :  { %v2876_v59 = vrot.slane %v2875_v49, 4  ;;  %v2823_v3 = vadd.f32 %v2822_v58, %v2821_v22 }
 0x21d   :  { %3394 = shalt.err (!%p3391_p4)
}
 0x21e   :  { %s3395_s15 = scalar_lea.hbm %s4428_s2, 1024 }
 0x21f   :  { %p3396_p5 = scmp.ne.s32.totalorder %s4428_s2, %s3395_s15  ;;  %p3399_p6 = scmp.lt.u32.totalorder %s3395_s15, %s4428_s2 }
 0x221   :  { %p3401_p7 = pnand %p3399_p6, %p3396_p5 }
 0x223   :  { %3404 = shalt.err (!%p3401_p7)
}
 0x224   :  { %s3434_s19 = smov 4   ;;  %v2877_v60 = vadd.f32 %v2876_v59, %v2875_v49  ;;  %v2824_v29 = vrot.slane %v2823_v3, 2  ;;  %s3435_s22 = smov [#allocation6]   ;;  %vm2886_vm15 = vcmask 1040896  }
 0x225   :  { %2931 = dma.vmem_to_hbm [thread:$0]  %s2926_s11, 1024, %s4428_s2, [#allocation5], %s3432_s24, %s3432_s24, %s3434_s19  }
 0x226   :  { %v2878_v13 = vrot.slane %v2877_v60, 2  ;;  %v2825_v38 = vadd.f32 %v2824_v29, %v2823_v3  ;;  %s2938_s23 = sshll.u32 %s3435_s22, 4  ;;  %s2939_s23 = int_to_ptr.vmem [resolvable:$true] %s2938_s23 }
 0x227   :  { %s3405_s2 = scalar_lea.vmem %s2939_s23, 16  ;;  %s3409_s25 = scalar_lea.vmem %s2939_s23, 32 }
 0x228   :  { %v2879_v23 = vadd.f32 %v2878_v13, %v2877_v60  ;;  %v2826_v63 = vrot.slane %v2825_v38, 1  ;;  %p3406_p8 = scmp.ne.s32.totalorder %s2939_s23, %s3405_s2  ;;  %p3410_p9 = scmp.lt.s32.totalorder %s2939_s23, %s2939_s23 }
 0x229   :  { %p3411_p10 = scmp.lt.s32.totalorder %s3409_s25, %s3405_s2 }
 0x22a   :  { %v2880_v8 = vrot.slane %v2879_v23, 1  ;;  %v2827_v27 = vadd.f32 %v2826_v63, %v2825_v38 }
 0x22b   :  { %p3412_p11 = por %p3411_p10, %p3410_p9 }
 0x22c   :  { %v2881_v4 = vadd.f32 %v2880_v8, %v2879_v23  ;;  %2828 = vst.msk [vmem:[#allocation6] sm:$0x1] %vm50_vm0, %v2827_v27 }
 0x22d   :  { %p3413_p12 = pnand %p3412_p11, %p3406_p8 }
 0x22e   :  { %2883 = vrot.lane.b32.xlu0 %v2881_v4, %s3432_s24 }
 0x2a0   :  { %v2884_v10 = vpop.permute.xlu0 %2883 }
 0x2a1   :  { %2887 = vst.msk [vmem:[#allocation6] sm:$0x1] %vm2886_vm15, %v2884_v10 }
 0x2a2   :  { %3416 = shalt.err (!%p3413_p12)
}
 0x2a3   :  { %s3417_s28 = scalar_lea.hbm %s4429_s3, 16 }
 0x2a4   :  { %p3418_p13 = scmp.ne.s32.totalorder %s4429_s3, %s3417_s28  ;;  %p3421_p0 = scmp.lt.u32.totalorder %s3417_s28, %s4429_s3 }
 0x2a6   :  { %p3423_p1 = pnand %p3421_p0, %p3418_p13 }
 0x2a8   :  { %3426 = shalt.err (!%p3423_p1)
}
 0x2a9   :  { %2941 = dma.vmem_to_hbm [thread:$0]  %s2939_s23, 16, %s4429_s3, [#allocation7]  }
 0x2aa   :  { %3427 = dma.done.wait [#allocation5], 1024  }
 0x2ab   :  { %3428 = vsyncadd [#allocation5], 4294966272 }
 0x2ac   :  { %3429 = dma.done.wait [#allocation7], 16  }
 0x2ad   :  { %3430 = vsyncadd [#allocation7], 4294967280 }
 0x2ae   :  { %2948 = vsyncpa [#allocation5], 1 }
 0x2af   :  { %2949 = vsyncpa [#allocation7], 1 }

</bundles_post_ra>
